<compile_context>
chip_gen: v6e
topology: v6e:2x2x1
jax: 0.10.0
libtpu: 0.0.40
codegen_flags: <defaults>
</compile_context>

<pallas_src>
import functools
import math

import jax
import jax.numpy as jnp
from jax.experimental import pallas as pl
from jax.experimental.pallas import tpu as pltpu


# ----------------------------- tiling / compile config ----------------------

_VMEM_LIMIT = 48 * 1024 * 1024      # fits v5e/v6e (128 MiB) and v7x (64 MiB)
_TM, _TN, _TK = 256, 512, 512       # preferred GEMM tiles (bf16 operands)


def _cp(sems):
    return pltpu.CompilerParams(dimension_semantics=sems,
                                vmem_limit_bytes=_VMEM_LIMIT)


def _tile(dim, pref):
    """Largest clean tile: whole dim if small, else pref when it divides."""
    if dim <= pref:
        return dim
    if dim % pref == 0:
        return pref
    # TODO(synk): pad awkward dims (e.g. vocab) to a multiple of 128 for real
    # configs instead of falling back to a whole-dim block.
    return dim


# ----------------------------- tiled GEMM (+bias, +act) ---------------------

def _matmul_kernel(x_ref, w_ref, b_ref, o_ref, acc_ref, *, activation):
    k = pl.program_id(2)

    @pl.when(k == 0)
    def _init():
        acc_ref[...] = jnp.zeros_like(acc_ref)

    acc_ref[...] += jnp.dot(x_ref[...], w_ref[...],
                            preferred_element_type=jnp.float32)

    @pl.when(k == pl.num_programs(2) - 1)
    def _fin():
        y = acc_ref[...] + b_ref[...]
        if activation == "relu":
            y = jnp.maximum(y, 0.0)
        elif activation == "tanh":
            y = jnp.tanh(y)
        o_ref[...] = y.astype(o_ref.dtype)


def matmul_bias_act(x, w, b, activation="none", out_dtype=jnp.bfloat16):
    """act(x @ w + b).  x: (M, K) bf16, w: (K, N) bf16, b: (N,) f32."""
    M, K = x.shape
    K2, N = w.shape
    assert K == K2
    tm, tn, tk = _tile(M, _TM), _tile(N, _TN), _tile(K, _TK)
    grid = (M // tm, N // tn, K // tk)
    gs = pltpu.PrefetchScalarGridSpec(
        num_scalar_prefetch=0,
        grid=grid,
        in_specs=[
            pl.BlockSpec((tm, tk), lambda i, j, k: (i, k)),
            pl.BlockSpec((tk, tn), lambda i, j, k: (k, j)),
            pl.BlockSpec((1, tn), lambda i, j, k: (0, j)),
        ],
        out_specs=pl.BlockSpec((tm, tn), lambda i, j, k: (i, j)),
        scratch_shapes=[pltpu.VMEM((tm, tn), jnp.float32)],
    )
    return pl.pallas_call(
        functools.partial(_matmul_kernel, activation=activation),
        out_shape=jax.ShapeDtypeStruct((M, N), out_dtype),
        grid_spec=gs,
        compiler_params=_cp(("parallel", "parallel", "arbitrary")),
    )(x, w, b.reshape(1, N).astype(jnp.float32))


# ------------------ tiled GEMM with fused (residual +) LayerNorm ------------

def _matmul_ln_body(x_ref, w_ref, b_ref, res_ref, g_ref, be_ref, o_ref,
                    acc_ref, *, eps, activation):
    k = pl.program_id(1)

    @pl.when(k == 0)
    def _init():
        acc_ref[...] = jnp.zeros_like(acc_ref)

    acc_ref[...] += jnp.dot(x_ref[...], w_ref[...],
                            preferred_element_type=jnp.float32)

    @pl.when(k == pl.num_programs(1) - 1)
    def _fin():
        z = acc_ref[...] + b_ref[...]
        if activation == "relu":
            z = jnp.maximum(z, 0.0)
        if res_ref is not None:                       # AddNorm residual path
            z = z + res_ref[...].astype(jnp.float32)
        mu = jnp.mean(z, axis=-1, keepdims=True)      # LayerNorm in f32
        var = jnp.mean((z - mu) ** 2, axis=-1, keepdims=True)
        zn = (z - mu) * jax.lax.rsqrt(var + eps)
        o_ref[...] = (zn * g_ref[...] + be_ref[...]).astype(o_ref.dtype)


def _matmul_add_ln_kernel(x_ref, w_ref, b_ref, res_ref, g_ref, be_ref, o_ref,
                          acc_ref, *, eps, activation):
    _matmul_ln_body(x_ref, w_ref, b_ref, res_ref, g_ref, be_ref, o_ref,
                    acc_ref, eps=eps, activation=activation)


def _matmul_nores_ln_kernel(x_ref, w_ref, b_ref, g_ref, be_ref, o_ref,
                            acc_ref, *, eps, activation):
    _matmul_ln_body(x_ref, w_ref, b_ref, None, g_ref, be_ref, o_ref,
                    acc_ref, eps=eps, activation=activation)


def matmul_ln(x, w, b, gamma, beta, residual=None, activation="none",
              eps=1e-5, out_dtype=jnp.bfloat16):
    """LayerNorm(act(x @ w + b) [+ residual]) fused into the GEMM epilogue.

    The LayerNorm axis N is a single block; M and K are tiled.
    """
    M, K = x.shape
    _, N = w.shape
    tm, tk = _tile(M, _TM), _tile(K, _TK)
    grid = (M // tm, K // tk)

    in_specs = [
        pl.BlockSpec((tm, tk), lambda i, k: (i, k)),
        pl.BlockSpec((tk, N), lambda i, k: (k, 0)),
        pl.BlockSpec((1, N), lambda i, k: (0, 0)),
    ]
    args = [x, w, b.reshape(1, N).astype(jnp.float32)]
    if residual is not None:
        in_specs.append(pl.BlockSpec((tm, N), lambda i, k: (i, 0)))
        args.append(residual)
        kernel = functools.partial(_matmul_add_ln_kernel, eps=eps,
                                   activation=activation)
    else:
        kernel = functools.partial(_matmul_nores_ln_kernel, eps=eps,
                                   activation=activation)
    in_specs += [
        pl.BlockSpec((1, N), lambda i, k: (0, 0)),
        pl.BlockSpec((1, N), lambda i, k: (0, 0)),
    ]
    args += [gamma.reshape(1, N).astype(jnp.float32),
             beta.reshape(1, N).astype(jnp.float32)]

    gs = pltpu.PrefetchScalarGridSpec(
        num_scalar_prefetch=0,
        grid=grid,
        in_specs=in_specs,
        out_specs=pl.BlockSpec((tm, N), lambda i, k: (i, 0)),
        scratch_shapes=[pltpu.VMEM((tm, N), jnp.float32)],
    )
    return pl.pallas_call(
        kernel,
        out_shape=jax.ShapeDtypeStruct((M, N), out_dtype),
        grid_spec=gs,
        compiler_params=_cp(("parallel", "arbitrary")),
    )(*args)


# ------------------------------- attention kernel ---------------------------

def _attention_kernel(vl_ref, qkv_ref, o_ref, *, num_heads, num_hiddens, scale):
    b = pl.program_id(0)
    vlen = vl_ref[b]
    qkv = qkv_ref[0]                      # (S, 3H) bf16, one DMA for all heads
    S = qkv.shape[0]
    H = num_hiddens
    Dh = H // num_heads
    col = jax.lax.broadcasted_iota(jnp.int32, (S, S), 1)
    keep = col < vlen                     # d2l masked_softmax semantics

    for h in range(num_heads):            # static unroll; heads share the DMA
        q = qkv[:, h * Dh:(h + 1) * Dh]
        k = qkv[:, H + h * Dh:H + (h + 1) * Dh]
        v = qkv[:, 2 * H + h * Dh:2 * H + (h + 1) * Dh]
        s = jax.lax.dot_general(q, k, (((1,), (1,)), ((), ())),
                                preferred_element_type=jnp.float32) * scale
        s = jnp.where(keep, s, -1e6)
        s = s - jnp.max(s, axis=-1, keepdims=True)
        p = jnp.exp(s)                    # softmax in f32 (VPU/EUP)
        p = p * pl.reciprocal(jnp.sum(p, axis=-1, keepdims=True), approx=True)
        o = jnp.dot(p.astype(v.dtype), v, preferred_element_type=jnp.float32)
        o_ref[0, :, h * Dh:(h + 1) * Dh] = o.astype(o_ref.dtype)


def multi_head_attention_from_qkv(qkv, valid_lens, num_heads, num_hiddens):
    """qkv: (B, S, 3H) bf16 -> (B, S, H) attention output (heads merged)."""
    B, S, H3 = qkv.shape
    H = num_hiddens
    Dh = H // num_heads
    scale = 1.0 / math.sqrt(Dh)
    gs = pltpu.PrefetchScalarGridSpec(
        num_scalar_prefetch=1,
        grid=(B,),
        in_specs=[pl.BlockSpec((1, S, H3), lambda b, vl: (b, 0, 0))],
        out_specs=pl.BlockSpec((1, S, H), lambda b, vl: (b, 0, 0)),
    )
    return pl.pallas_call(
        functools.partial(_attention_kernel, num_heads=num_heads,
                          num_hiddens=H, scale=scale),
        out_shape=jax.ShapeDtypeStruct((B, S, H), jnp.bfloat16),
        grid_spec=gs,
        compiler_params=_cp(("parallel",)),
    )(valid_lens.astype(jnp.int32), qkv)


# ------------------------------- model (JAX glue) ---------------------------

def encoder_block(x, p, valid_lens, num_heads):
    B, S, H = x.shape
    x2 = x.reshape(B * S, H)
    # fused Q|K|V projection: one GEMM, activation read once
    qkv = matmul_bias_act(x2, p["Wqkv"], p["bqkv"])             # (B*S, 3H)
    attn = multi_head_attention_from_qkv(qkv.reshape(B, S, 3 * H),
                                         valid_lens, num_heads, H)
    # Wo projection with Add & LayerNorm fused in the epilogue
    y = matmul_ln(attn.reshape(B * S, H), p["Wo"], p["bo"],
                  p["ln1_g"], p["ln1_b"], residual=x2)
    # position-wise FFN: relu GEMM, then second GEMM with Add & LayerNorm fused
    h = matmul_bias_act(y, p["ffn_W1"], p["ffn_b1"], activation="relu")
    z = matmul_ln(h, p["ffn_W2"], p["ffn_b2"],
                  p["ln2_g"], p["ln2_b"], residual=y)
    return z.reshape(B, S, H)


def bert_encoder(cparams, tokens, segments, valid_lens, num_heads):
    S = tokens.shape[1]
    # TODO(synk): embedding gathers stay in plain JAX (no clean Pallas win).
    x = cparams["tok_emb"][tokens] + cparams["seg_emb"][segments]
    x = x + cparams["pos_emb"][:, :S, :]
    x = x.astype(jnp.bfloat16)
    for blk in cparams["blocks"]:
        x = encoder_block(x, blk, valid_lens, num_heads)
    return x


def bert_model_forward(cparams, tokens, segments, valid_lens,
                       pred_positions=None, *, num_heads):
    enc = bert_encoder(cparams, tokens, segments, valid_lens, num_heads)
    B, S, H = enc.shape

    mlm_y_hat = None
    if pred_positions is not None:
        num_pred = pred_positions.shape[1]
        batch_idx = jnp.repeat(jnp.arange(B), num_pred)
        masked_x = enc[batch_idx, pred_positions.reshape(-1)]   # (B*num_pred, H)
        # MaskLM: LayerNorm(relu(x @ W1 + b1)), LN fused into the GEMM
        hdn = matmul_ln(masked_x, cparams["mlm_W1"], cparams["mlm_b1"],
                        cparams["mlm_ln_g"], cparams["mlm_ln_b"],
                        activation="relu")
        logits = matmul_bias_act(hdn, cparams["mlm_W2"], cparams["mlm_b2"],
                                 out_dtype=jnp.float32)
        mlm_y_hat = logits.reshape(B, num_pred, -1)

    cls = enc[:, 0, :]                                          # (B, H)
    hid = matmul_bias_act(cls, cparams["hid_W"], cparams["hid_b"],
                          activation="tanh")
    nsp_y_hat = matmul_bias_act(hid, cparams["nsp_W"], cparams["nsp_b"],
                                out_dtype=jnp.float32)          # (B, 2)
    return enc.astype(jnp.float32), mlm_y_hat, nsp_y_hat


# ----------------------------- parameter init / prep ------------------------

def init_params(key, *, vocab_size, num_hiddens, ffn_num_hiddens,
                num_layers, max_len):
    H = num_hiddens
    keys = iter(jax.random.split(key, 256))

    def W(shape, scale=0.02):
        return (scale * jax.random.normal(next(keys), shape)).astype(jnp.float32)

    zeros = lambda s: jnp.zeros(s, jnp.float32)
    ones = lambda s: jnp.ones(s, jnp.float32)

    params = {
        "tok_emb": W((vocab_size, H), 1.0),       # nn.Embedding ~ N(0,1)
        "seg_emb": W((2, H), 1.0),
        "pos_emb": W((1, max_len, H), 1.0),       # torch.randn
        "blocks": [],
        "hid_W": W((H, H)), "hid_b": zeros((H,)),
        "mlm_W1": W((H, H)), "mlm_b1": zeros((H,)),
        "mlm_ln_g": ones((H,)), "mlm_ln_b": zeros((H,)),
        "mlm_W2": W((H, vocab_size)), "mlm_b2": zeros((vocab_size,)),
        "nsp_W": W((H, 2)), "nsp_b": zeros((2,)),
    }
    for _ in range(num_layers):
        params["blocks"].append({
            "attn": {
                "Wq": W((H, H)), "bq": zeros((H,)),
                "Wk": W((H, H)), "bk": zeros((H,)),
                "Wv": W((H, H)), "bv": zeros((H,)),
                "Wo": W((H, H)), "bo": zeros((H,)),
            },
            "ln1_g": ones((H,)), "ln1_b": zeros((H,)),
            "ffn_W1": W((H, ffn_num_hiddens)), "ffn_b1": zeros((ffn_num_hiddens,)),
            "ffn_W2": W((ffn_num_hiddens, H)), "ffn_b2": zeros((H,)),
            "ln2_g": ones((H,)), "ln2_b": zeros((H,)),
        })
    return params


def prepare_params(params):
    """Pack compute params: bf16 matmul weights, fused Wq|Wk|Wv, f32 LN/bias."""
    bf = lambda a: a.astype(jnp.bfloat16)
    cp = {
        "tok_emb": params["tok_emb"], "seg_emb": params["seg_emb"],
        "pos_emb": params["pos_emb"], "blocks": [],
        "hid_W": bf(params["hid_W"]), "hid_b": params["hid_b"],
        "mlm_W1": bf(params["mlm_W1"]), "mlm_b1": params["mlm_b1"],
        "mlm_ln_g": params["mlm_ln_g"], "mlm_ln_b": params["mlm_ln_b"],
        "mlm_W2": bf(params["mlm_W2"]), "mlm_b2": params["mlm_b2"],
        "nsp_W": bf(params["nsp_W"]), "nsp_b": params["nsp_b"],
    }
    for b in params["blocks"]:
        a = b["attn"]
        cp["blocks"].append({
            "Wqkv": bf(jnp.concatenate([a["Wq"], a["Wk"], a["Wv"]], axis=1)),
            "bqkv": jnp.concatenate([a["bq"], a["bk"], a["bv"]]),
            "Wo": bf(a["Wo"]), "bo": a["bo"],
            "ln1_g": b["ln1_g"], "ln1_b": b["ln1_b"],
            "ffn_W1": bf(b["ffn_W1"]), "ffn_b1": b["ffn_b1"],
            "ffn_W2": bf(b["ffn_W2"]), "ffn_b2": b["ffn_b2"],
            "ln2_g": b["ln2_g"], "ln2_b": b["ln2_b"],
        })
    return cp


# ----------------------------------- main ------------------------------------

if __name__ == "__main__":
    # small BERT config (key/query/value/hid/mlm/nsp in-features == num_hiddens)
    vocab_size, num_hiddens, ffn_num_hiddens = 64, 32, 64
    num_heads, num_layers, max_len = 2, 2, 64
    B, S = 2, 8

    key = jax.random.PRNGKey(0)
    kp, kt = jax.random.split(key)

    params = init_params(kp, vocab_size=vocab_size, num_hiddens=num_hiddens,
                         ffn_num_hiddens=ffn_num_hiddens,
                         num_layers=num_layers, max_len=max_len)
    cparams = prepare_params(params)

    tokens = jax.random.randint(kt, (B, S), 0, vocab_size, dtype=jnp.int32)
    segments = jnp.concatenate(
        [jnp.zeros((B, S // 2), jnp.int32), jnp.ones((B, S // 2), jnp.int32)], axis=1)
    valid_lens = jnp.array([S, S - 2], jnp.int32)
    pred_positions = jnp.array([[1, 3, 5], [0, 2, 6]], jnp.int32)

    # TODO(synk): dropout is treated as identity (eval mode / dropout prob 0).
    fwd = jax.jit(functools.partial(bert_model_forward, num_heads=num_heads))
    enc, mlm_y_hat, nsp_y_hat = fwd(cparams, tokens, segments, valid_lens,
                                    pred_positions)

    jax.block_until_ready((enc, mlm_y_hat, nsp_y_hat))
    assert enc.shape == (B, S, num_hiddens)
    assert mlm_y_hat.shape == (B, 3, vocab_size)
    assert nsp_y_hat.shape == (B, 2)
    print("KERNEL_OK")
</pallas_src>

<mosaic_0001>
module attributes {stable_mosaic.version = 11 : i64} {
  func.func @_attention_kernel(%arg0: i32, %arg1: memref<2xi32, #tpu.memory_space<smem>>, %arg2: memref<1x8x96xbf16, #tpu.memory_space<vmem>>, %arg3: memref<1x8x32xbf16, #tpu.memory_space<vmem>>) attributes {dimension_semantics = [#tpu.dimension_semantics<parallel>], iteration_bounds = array<i64: 2>, scalar_prefetch = 1 : i64, scratch_operands = 0 : i64, tpu.core_type = #tpu.core_type<tc>, window_params = [{transform_indices = @transform_0, window_bounds = array<i64: 1, 8, 96>}, {transform_indices = @transform_1, window_bounds = array<i64: 1, 8, 32>}]} {
    %0 = arith.index_cast %arg0 : i32 to index
    %1 = memref.load %arg1[%0] : memref<2xi32, #tpu.memory_space<smem>>
    %c0 = arith.constant 0 : index
    %c0_0 = arith.constant 0 : index
    %c0_1 = arith.constant 0 : index
    %2 = vector.load %arg2[%c0, %c0_0, %c0_1] : memref<1x8x96xbf16, #tpu.memory_space<vmem>>, vector<1x8x96xbf16>
    %3 = vector.shape_cast %2 : vector<1x8x96xbf16> to vector<8x96xbf16>
    %4 = tpu.iota {dimensions = array<i32: 1>} : vector<8x8xi32>
    %5 = vector.broadcast %1 : i32 to vector<8x8xi32>
    %6 = arith.cmpi slt, %4, %5 : vector<8x8xi32>
    %7 = vector.extract_strided_slice %3 {offsets = [0, 0], sizes = [8, 16], strides = [1, 1]} : vector<8x96xbf16> to vector<8x16xbf16>
    %8 = vector.extract_strided_slice %3 {offsets = [0, 32], sizes = [8, 16], strides = [1, 1]} : vector<8x96xbf16> to vector<8x16xbf16>
    %9 = vector.extract_strided_slice %3 {offsets = [0, 64], sizes = [8, 16], strides = [1, 1]} : vector<8x96xbf16> to vector<8x16xbf16>
    %cst = arith.constant dense<0.000000e+00> : vector<8x8xf32>
    %10 = tpu.matmul %7, %8, %cst {dimension_numbers = #tpu.dot_dimension_numbers<[1], [1], [0], [0], [0, 0, 1, 0], [], []>} : vector<8x16xbf16>, vector<8x16xbf16>, vector<8x8xf32> -> vector<8x8xf32>
    %cst_2 = arith.constant 2.500000e-01 : f32
    %11 = vector.broadcast %cst_2 : f32 to vector<8x8xf32>
    %12 = arith.mulf %10, %11 : vector<8x8xf32>
    %cst_3 = arith.constant -1.000000e+06 : f32
    %13 = vector.broadcast %cst_3 : f32 to vector<8x8xf32>
    %14 = arith.select %6, %12, %13 : vector<8x8xi1>, vector<8x8xf32>
    %cst_4 = arith.constant dense<0xFF800000> : vector<8xf32>
    %15 = vector.multi_reduction <maximumf>, %14, %cst_4 [1] : vector<8x8xf32> to vector<8xf32>
    %16 = vector.shape_cast %15 : vector<8xf32> to vector<8x1xf32>
    %17 = vector.broadcast %16 : vector<8x1xf32> to vector<8x8xf32>
    %18 = arith.subf %14, %17 : vector<8x8xf32>
    %19 = math.exp %18 : vector<8x8xf32>
    %cst_5 = arith.constant dense<0.000000e+00> : vector<8xf32>
    %20 = vector.multi_reduction <add>, %19, %cst_5 [1] : vector<8x8xf32> to vector<8xf32>
    %21 = vector.shape_cast %20 : vector<8xf32> to vector<8x1xf32>
    %22 = tpu.reciprocal %21 {approx = true} : vector<8x1xf32> -> vector<8x1xf32>
    %23 = vector.broadcast %22 : vector<8x1xf32> to vector<8x8xf32>
    %24 = arith.mulf %19, %23 : vector<8x8xf32>
    %25 = arith.truncf %24 : vector<8x8xf32> to vector<8x8xbf16>
    %cst_6 = arith.constant dense<0.000000e+00> : vector<8x16xf32>
    %26 = tpu.matmul %25, %9, %cst_6 {dimension_numbers = #tpu.dot_dimension_numbers<[1], [0], [0], [1], [0, 0, 1, 1], [], []>} : vector<8x8xbf16>, vector<8x16xbf16>, vector<8x16xf32> -> vector<8x16xf32>
    %27 = arith.truncf %26 : vector<8x16xf32> to vector<8x16xbf16>
    %c0_7 = arith.constant 0 : index
    %c0_8 = arith.constant 0 : index
    %c0_9 = arith.constant 0 : index
    %28 = vector.load %arg3[%c0_7, %c0_8, %c0_9] : memref<1x8x32xbf16, #tpu.memory_space<vmem>>, vector<1x8x16xbf16>
    %29 = vector.shape_cast %28 : vector<1x8x16xbf16> to vector<8x16xbf16>
    %30 = vector.shape_cast %27 : vector<8x16xbf16> to vector<1x8x16xbf16>
    tpu.vector_store %arg3[%c0_7, %c0_8, %c0_9], %30 {strides = array<i32>} : memref<1x8x32xbf16, #tpu.memory_space<vmem>>, vector<1x8x16xbf16>,
    %31 = vector.extract_strided_slice %3 {offsets = [0, 16], sizes = [8, 16], strides = [1, 1]} : vector<8x96xbf16> to vector<8x16xbf16>
    %32 = vector.extract_strided_slice %3 {offsets = [0, 48], sizes = [8, 16], strides = [1, 1]} : vector<8x96xbf16> to vector<8x16xbf16>
    %33 = vector.extract_strided_slice %3 {offsets = [0, 80], sizes = [8, 16], strides = [1, 1]} : vector<8x96xbf16> to vector<8x16xbf16>
    %cst_10 = arith.constant dense<0.000000e+00> : vector<8x8xf32>
    %34 = tpu.matmul %31, %32, %cst_10 {dimension_numbers = #tpu.dot_dimension_numbers<[1], [1], [0], [0], [0, 0, 1, 0], [], []>} : vector<8x16xbf16>, vector<8x16xbf16>, vector<8x8xf32> -> vector<8x8xf32>
    %cst_11 = arith.constant 2.500000e-01 : f32
    %35 = vector.broadcast %cst_11 : f32 to vector<8x8xf32>
    %36 = arith.mulf %34, %35 : vector<8x8xf32>
    %cst_12 = arith.constant -1.000000e+06 : f32
    %37 = vector.broadcast %cst_12 : f32 to vector<8x8xf32>
    %38 = arith.select %6, %36, %37 : vector<8x8xi1>, vector<8x8xf32>
    %cst_13 = arith.constant dense<0xFF800000> : vector<8xf32>
    %39 = vector.multi_reduction <maximumf>, %38, %cst_13 [1] : vector<8x8xf32> to vector<8xf32>
    %40 = vector.shape_cast %39 : vector<8xf32> to vector<8x1xf32>
    %41 = vector.broadcast %40 : vector<8x1xf32> to vector<8x8xf32>
    %42 = arith.subf %38, %41 : vector<8x8xf32>
    %43 = math.exp %42 : vector<8x8xf32>
    %cst_14 = arith.constant dense<0.000000e+00> : vector<8xf32>
    %44 = vector.multi_reduction <add>, %43, %cst_14 [1] : vector<8x8xf32> to vector<8xf32>
    %45 = vector.shape_cast %44 : vector<8xf32> to vector<8x1xf32>
    %46 = tpu.reciprocal %45 {approx = true} : vector<8x1xf32> -> vector<8x1xf32>
    %47 = vector.broadcast %46 : vector<8x1xf32> to vector<8x8xf32>
    %48 = arith.mulf %43, %47 : vector<8x8xf32>
    %49 = arith.truncf %48 : vector<8x8xf32> to vector<8x8xbf16>
    %cst_15 = arith.constant dense<0.000000e+00> : vector<8x16xf32>
    %50 = tpu.matmul %49, %33, %cst_15 {dimension_numbers = #tpu.dot_dimension_numbers<[1], [0], [0], [1], [0, 0, 1, 1], [], []>} : vector<8x8xbf16>, vector<8x16xbf16>, vector<8x16xf32> -> vector<8x16xf32>
    %51 = arith.truncf %50 : vector<8x16xf32> to vector<8x16xbf16>
    %c0_16 = arith.constant 0 : index
    %c0_17 = arith.constant 0 : index
    %c16 = arith.constant 16 : index
    %52 = vector.load %arg3[%c0_16, %c0_17, %c16] : memref<1x8x32xbf16, #tpu.memory_space<vmem>>, vector<1x8x16xbf16>
    %53 = vector.shape_cast %52 : vector<1x8x16xbf16> to vector<8x16xbf16>
    %54 = vector.shape_cast %51 : vector<8x16xbf16> to vector<1x8x16xbf16>
    tpu.vector_store %arg3[%c0_16, %c0_17, %c16], %54 {strides = array<i32>} : memref<1x8x32xbf16, #tpu.memory_space<vmem>>, vector<1x8x16xbf16>,
    return
  }
  func.func @transform_0(%arg0: i32, %arg1: memref<2xi32, #tpu.memory_space<smem>>) -> (i32, i32, i32) {
    %c0_i32 = arith.constant 0 : i32
    %c0_i32_0 = arith.constant 0 : i32
    %c0_i32_1 = arith.constant 0 : i32
    return %arg0, %c0_i32, %c0_i32_0 : i32, i32, i32
  }
  func.func @transform_1(%arg0: i32, %arg1: memref<2xi32, #tpu.memory_space<smem>>) -> (i32, i32, i32) {
    %c0_i32 = arith.constant 0 : i32
    %c0_i32_0 = arith.constant 0 : i32
    %c0_i32_1 = arith.constant 0 : i32
    return %arg0, %c0_i32, %c0_i32_0 : i32, i32, i32
  }
}

module attributes {stable_mosaic.version = 11 : i64} {
  func.func @_matmul_kernel(%arg0: i32, %arg1: i32, %arg2: i32, %arg3: memref<16x32xbf16, #tpu.memory_space<vmem>>, %arg4: memref<32x96xbf16, #tpu.memory_space<vmem>>, %arg5: memref<1x96xf32, #tpu.memory_space<vmem>>, %arg6: memref<16x96xbf16, #tpu.memory_space<vmem>>, %arg7: memref<16x96xf32, #tpu.memory_space<vmem>>) attributes {dimension_semantics = [#tpu.dimension_semantics<parallel>, #tpu.dimension_semantics<parallel>, #tpu.dimension_semantics<arbitrary>], iteration_bounds = array<i64: 1, 1, 1>, scalar_prefetch = 0 : i64, scratch_operands = 1 : i64, tpu.core_type = #tpu.core_type<tc>, window_params = [{transform_indices = @transform_0, window_bounds = array<i64: 16, 32>}, {transform_indices = @transform_1, window_bounds = array<i64: 32, 96>}, {transform_indices = @transform_2, window_bounds = array<i64: 1, 96>}, {transform_indices = @transform_3, window_bounds = array<i64: 16, 96>}]} {
    %c0_i32 = arith.constant 0 : i32
    %0 = arith.cmpi eq, %arg2, %c0_i32 : i32
    %1 = arith.extui %0 : i1 to i32
    %c0_i32_0 = arith.constant 0 : i32
    %2 = arith.cmpi ne, %1, %c0_i32_0 : i32
    scf.if %2 {
      %cst_10 = arith.constant 0.000000e+00 : f32
      %12 = vector.broadcast %cst_10 : f32 to vector<16x96xf32>
      %c0_11 = arith.constant 0 : index
      %c0_12 = arith.constant 0 : index
      %13 = vector.load %arg7[%c0_11, %c0_12] : memref<16x96xf32, #tpu.memory_space<vmem>>, vector<16x96xf32>
      tpu.vector_store %arg7[%c0_11, %c0_12], %12 {strides = array<i32>} : memref<16x96xf32, #tpu.memory_space<vmem>>, vector<16x96xf32>,
    } else {
    }
    %c0 = arith.constant 0 : index
    %c0_1 = arith.constant 0 : index
    %3 = vector.load %arg7[%c0, %c0_1] : memref<16x96xf32, #tpu.memory_space<vmem>>, vector<16x96xf32>
    %c0_2 = arith.constant 0 : index
    %c0_3 = arith.constant 0 : index
    %4 = vector.load %arg3[%c0_2, %c0_3] : memref<16x32xbf16, #tpu.memory_space<vmem>>, vector<16x32xbf16>
    %c0_4 = arith.constant 0 : index
    %c0_5 = arith.constant 0 : index
    %5 = vector.load %arg4[%c0_4, %c0_5] : memref<32x96xbf16, #tpu.memory_space<vmem>>, vector<32x96xbf16>
    %cst = arith.constant dense<0.000000e+00> : vector<16x96xf32>
    %6 = tpu.matmul %4, %5, %cst {dimension_numbers = #tpu.dot_dimension_numbers<[1], [0], [0], [1], [0, 0, 1, 1], [], []>} : vector<16x32xbf16>, vector<32x96xbf16>, vector<16x96xf32> -> vector<16x96xf32>
    %7 = arith.addf %3, %6 : vector<16x96xf32>
    %c0_6 = arith.constant 0 : index
    %c0_7 = arith.constant 0 : index
    %8 = vector.load %arg7[%c0_6, %c0_7] : memref<16x96xf32, #tpu.memory_space<vmem>>, vector<16x96xf32>
    tpu.vector_store %arg7[%c0_6, %c0_7], %7 {strides = array<i32>} : memref<16x96xf32, #tpu.memory_space<vmem>>, vector<16x96xf32>,
    %c0_i32_8 = arith.constant 0 : i32
    %9 = arith.cmpi eq, %arg2, %c0_i32_8 : i32
    %10 = arith.extui %9 : i1 to i32
    %c0_i32_9 = arith.constant 0 : i32
    %11 = arith.cmpi ne, %10, %c0_i32_9 : i32
    scf.if %11 {
      %c0_10 = arith.constant 0 : index
      %c0_11 = arith.constant 0 : index
      %12 = vector.load %arg7[%c0_10, %c0_11] : memref<16x96xf32, #tpu.memory_space<vmem>>, vector<16x96xf32>
      %c0_12 = arith.constant 0 : index
      %c0_13 = arith.constant 0 : index
      %13 = vector.load %arg5[%c0_12, %c0_13] : memref<1x96xf32, #tpu.memory_space<vmem>>, vector<1x96xf32>
      %14 = vector.broadcast %13 : vector<1x96xf32> to vector<16x96xf32>
      %15 = arith.addf %12, %14 : vector<16x96xf32>
      %16 = arith.truncf %15 : vector<16x96xf32> to vector<16x96xbf16>
      %c0_14 = arith.constant 0 : index
      %c0_15 = arith.constant 0 : index
      %17 = vector.load %arg6[%c0_14, %c0_15] : memref<16x96xbf16, #tpu.memory_space<vmem>>, vector<16x96xbf16>
      tpu.vector_store %arg6[%c0_14, %c0_15], %16 {strides = array<i32>} : memref<16x96xbf16, #tpu.memory_space<vmem>>, vector<16x96xbf16>,
    } else {
    }
    return
  }
  func.func @transform_0(%arg0: i32, %arg1: i32, %arg2: i32) -> (i32, i32) {
    %c0_i32 = arith.constant 0 : i32
    return %arg0, %arg2 : i32, i32
  }
  func.func @transform_1(%arg0: i32, %arg1: i32, %arg2: i32) -> (i32, i32) {
    %c0_i32 = arith.constant 0 : i32
    return %arg2, %arg1 : i32, i32
  }
  func.func @transform_2(%arg0: i32, %arg1: i32, %arg2: i32) -> (i32, i32) {
    %c0_i32 = arith.constant 0 : i32
    %c0_i32_0 = arith.constant 0 : i32
    return %c0_i32, %arg1 : i32, i32
  }
  func.func @transform_3(%arg0: i32, %arg1: i32, %arg2: i32) -> (i32, i32) {
    %c0_i32 = arith.constant 0 : i32
    return %arg0, %arg1 : i32, i32
  }
}

module attributes {stable_mosaic.version = 11 : i64} {
  func.func @_matmul_kernel(%arg0: i32, %arg1: i32, %arg2: i32, %arg3: memref<16x32xbf16, #tpu.memory_space<vmem>>, %arg4: memref<32x64xbf16, #tpu.memory_space<vmem>>, %arg5: memref<1x64xf32, #tpu.memory_space<vmem>>, %arg6: memref<16x64xbf16, #tpu.memory_space<vmem>>, %arg7: memref<16x64xf32, #tpu.memory_space<vmem>>) attributes {dimension_semantics = [#tpu.dimension_semantics<parallel>, #tpu.dimension_semantics<parallel>, #tpu.dimension_semantics<arbitrary>], iteration_bounds = array<i64: 1, 1, 1>, scalar_prefetch = 0 : i64, scratch_operands = 1 : i64, tpu.core_type = #tpu.core_type<tc>, window_params = [{transform_indices = @transform_0, window_bounds = array<i64: 16, 32>}, {transform_indices = @transform_1, window_bounds = array<i64: 32, 64>}, {transform_indices = @transform_2, window_bounds = array<i64: 1, 64>}, {transform_indices = @transform_3, window_bounds = array<i64: 16, 64>}]} {
    %c0_i32 = arith.constant 0 : i32
    %0 = arith.cmpi eq, %arg2, %c0_i32 : i32
    %1 = arith.extui %0 : i1 to i32
    %c0_i32_0 = arith.constant 0 : i32
    %2 = arith.cmpi ne, %1, %c0_i32_0 : i32
    scf.if %2 {
      %cst_10 = arith.constant 0.000000e+00 : f32
      %12 = vector.broadcast %cst_10 : f32 to vector<16x64xf32>
      %c0_11 = arith.constant 0 : index
      %c0_12 = arith.constant 0 : index
      %13 = vector.load %arg7[%c0_11, %c0_12] : memref<16x64xf32, #tpu.memory_space<vmem>>, vector<16x64xf32>
      tpu.vector_store %arg7[%c0_11, %c0_12], %12 {strides = array<i32>} : memref<16x64xf32, #tpu.memory_space<vmem>>, vector<16x64xf32>,
    } else {
    }
    %c0 = arith.constant 0 : index
    %c0_1 = arith.constant 0 : index
    %3 = vector.load %arg7[%c0, %c0_1] : memref<16x64xf32, #tpu.memory_space<vmem>>, vector<16x64xf32>
    %c0_2 = arith.constant 0 : index
    %c0_3 = arith.constant 0 : index
    %4 = vector.load %arg3[%c0_2, %c0_3] : memref<16x32xbf16, #tpu.memory_space<vmem>>, vector<16x32xbf16>
    %c0_4 = arith.constant 0 : index
    %c0_5 = arith.constant 0 : index
    %5 = vector.load %arg4[%c0_4, %c0_5] : memref<32x64xbf16, #tpu.memory_space<vmem>>, vector<32x64xbf16>
    %cst = arith.constant dense<0.000000e+00> : vector<16x64xf32>
    %6 = tpu.matmul %4, %5, %cst {dimension_numbers = #tpu.dot_dimension_numbers<[1], [0], [0], [1], [0, 0, 1, 1], [], []>} : vector<16x32xbf16>, vector<32x64xbf16>, vector<16x64xf32> -> vector<16x64xf32>
    %7 = arith.addf %3, %6 : vector<16x64xf32>
    %c0_6 = arith.constant 0 : index
    %c0_7 = arith.constant 0 : index
    %8 = vector.load %arg7[%c0_6, %c0_7] : memref<16x64xf32, #tpu.memory_space<vmem>>, vector<16x64xf32>
    tpu.vector_store %arg7[%c0_6, %c0_7], %7 {strides = array<i32>} : memref<16x64xf32, #tpu.memory_space<vmem>>, vector<16x64xf32>,
    %c0_i32_8 = arith.constant 0 : i32
    %9 = arith.cmpi eq, %arg2, %c0_i32_8 : i32
    %10 = arith.extui %9 : i1 to i32
    %c0_i32_9 = arith.constant 0 : i32
    %11 = arith.cmpi ne, %10, %c0_i32_9 : i32
    scf.if %11 {
      %c0_10 = arith.constant 0 : index
      %c0_11 = arith.constant 0 : index
      %12 = vector.load %arg7[%c0_10, %c0_11] : memref<16x64xf32, #tpu.memory_space<vmem>>, vector<16x64xf32>
      %c0_12 = arith.constant 0 : index
      %c0_13 = arith.constant 0 : index
      %13 = vector.load %arg5[%c0_12, %c0_13] : memref<1x64xf32, #tpu.memory_space<vmem>>, vector<1x64xf32>
      %14 = vector.broadcast %13 : vector<1x64xf32> to vector<16x64xf32>
      %15 = arith.addf %12, %14 : vector<16x64xf32>
      %cst_14 = arith.constant 0.000000e+00 : f32
      %16 = vector.broadcast %cst_14 : f32 to vector<16x64xf32>
      %17 = arith.maximumf %15, %16 : vector<16x64xf32>
      %18 = arith.truncf %17 : vector<16x64xf32> to vector<16x64xbf16>
      %c0_15 = arith.constant 0 : index
      %c0_16 = arith.constant 0 : index
      %19 = vector.load %arg6[%c0_15, %c0_16] : memref<16x64xbf16, #tpu.memory_space<vmem>>, vector<16x64xbf16>
      tpu.vector_store %arg6[%c0_15, %c0_16], %18 {strides = array<i32>} : memref<16x64xbf16, #tpu.memory_space<vmem>>, vector<16x64xbf16>,
    } else {
    }
    return
  }
  func.func @transform_0(%arg0: i32, %arg1: i32, %arg2: i32) -> (i32, i32) {
    %c0_i32 = arith.constant 0 : i32
    return %arg0, %arg2 : i32, i32
  }
  func.func @transform_1(%arg0: i32, %arg1: i32, %arg2: i32) -> (i32, i32) {
    %c0_i32 = arith.constant 0 : i32
    return %arg2, %arg1 : i32, i32
  }
  func.func @transform_2(%arg0: i32, %arg1: i32, %arg2: i32) -> (i32, i32) {
    %c0_i32 = arith.constant 0 : i32
    %c0_i32_0 = arith.constant 0 : i32
    return %c0_i32, %arg1 : i32, i32
  }
  func.func @transform_3(%arg0: i32, %arg1: i32, %arg2: i32) -> (i32, i32) {
    %c0_i32 = arith.constant 0 : i32
    return %arg0, %arg1 : i32, i32
  }
}

module attributes {stable_mosaic.version = 11 : i64} {
  func.func @_matmul_add_ln_kernel(%arg0: i32, %arg1: i32, %arg2: memref<16x32xbf16, #tpu.memory_space<vmem>>, %arg3: memref<32x32xbf16, #tpu.memory_space<vmem>>, %arg4: memref<1x32xf32, #tpu.memory_space<vmem>>, %arg5: memref<16x32xbf16, #tpu.memory_space<vmem>>, %arg6: memref<1x32xf32, #tpu.memory_space<vmem>>, %arg7: memref<1x32xf32, #tpu.memory_space<vmem>>, %arg8: memref<16x32xbf16, #tpu.memory_space<vmem>>, %arg9: memref<16x32xf32, #tpu.memory_space<vmem>>) attributes {dimension_semantics = [#tpu.dimension_semantics<parallel>, #tpu.dimension_semantics<arbitrary>], iteration_bounds = array<i64: 1, 1>, scalar_prefetch = 0 : i64, scratch_operands = 1 : i64, tpu.core_type = #tpu.core_type<tc>, window_params = [{transform_indices = @transform_0, window_bounds = array<i64: 16, 32>}, {transform_indices = @transform_1, window_bounds = array<i64: 32, 32>}, {pipeline_mode = #tpu.pipeline_mode<synchronous>, transform_indices = @transform_2, window_bounds = array<i64: 1, 32>}, {transform_indices = @transform_3, window_bounds = array<i64: 16, 32>}, {pipeline_mode = #tpu.pipeline_mode<synchronous>, transform_indices = @transform_4, window_bounds = array<i64: 1, 32>}, {pipeline_mode = #tpu.pipeline_mode<synchronous>, transform_indices = @transform_5, window_bounds = array<i64: 1, 32>}, {transform_indices = @transform_6, window_bounds = array<i64: 16, 32>}]} {
    %c0_i32 = arith.constant 0 : i32
    %0 = arith.cmpi eq, %arg1, %c0_i32 : i32
    %1 = arith.extui %0 : i1 to i32
    %c0_i32_0 = arith.constant 0 : i32
    %2 = arith.cmpi ne, %1, %c0_i32_0 : i32
    scf.if %2 {
      %cst_10 = arith.constant 0.000000e+00 : f32
      %12 = vector.broadcast %cst_10 : f32 to vector<16x32xf32>
      %c0_11 = arith.constant 0 : index
      %c0_12 = arith.constant 0 : index
      %13 = vector.load %arg9[%c0_11, %c0_12] : memref<16x32xf32, #tpu.memory_space<vmem>>, vector<16x32xf32>
      tpu.vector_store %arg9[%c0_11, %c0_12], %12 {strides = array<i32>} : memref<16x32xf32, #tpu.memory_space<vmem>>, vector<16x32xf32>,
    } else {
    }
    %c0 = arith.constant 0 : index
    %c0_1 = arith.constant 0 : index
    %3 = vector.load %arg9[%c0, %c0_1] : memref<16x32xf32, #tpu.memory_space<vmem>>, vector<16x32xf32>
    %c0_2 = arith.constant 0 : index
    %c0_3 = arith.constant 0 : index
    %4 = vector.load %arg2[%c0_2, %c0_3] : memref<16x32xbf16, #tpu.memory_space<vmem>>, vector<16x32xbf16>
    %c0_4 = arith.constant 0 : index
    %c0_5 = arith.constant 0 : index
    %5 = vector.load %arg3[%c0_4, %c0_5] : memref<32x32xbf16, #tpu.memory_space<vmem>>, vector<32x32xbf16>
    %cst = arith.constant dense<0.000000e+00> : vector<16x32xf32>
    %6 = tpu.matmul %4, %5, %cst {dimension_numbers = #tpu.dot_dimension_numbers<[1], [0], [0], [1], [0, 0, 1, 1], [], []>} : vector<16x32xbf16>, vector<32x32xbf16>, vector<16x32xf32> -> vector<16x32xf32>
    %7 = arith.addf %3, %6 : vector<16x32xf32>
    %c0_6 = arith.constant 0 : index
    %c0_7 = arith.constant 0 : index
    %8 = vector.load %arg9[%c0_6, %c0_7] : memref<16x32xf32, #tpu.memory_space<vmem>>, vector<16x32xf32>
    tpu.vector_store %arg9[%c0_6, %c0_7], %7 {strides = array<i32>} : memref<16x32xf32, #tpu.memory_space<vmem>>, vector<16x32xf32>,
    %c0_i32_8 = arith.constant 0 : i32
    %9 = arith.cmpi eq, %arg1, %c0_i32_8 : i32
    %10 = arith.extui %9 : i1 to i32
    %c0_i32_9 = arith.constant 0 : i32
    %11 = arith.cmpi ne, %10, %c0_i32_9 : i32
    scf.if %11 {
      %c0_10 = arith.constant 0 : index
      %c0_11 = arith.constant 0 : index
      %12 = vector.load %arg9[%c0_10, %c0_11] : memref<16x32xf32, #tpu.memory_space<vmem>>, vector<16x32xf32>
      %c0_12 = arith.constant 0 : index
      %c0_13 = arith.constant 0 : index
      %13 = vector.load %arg4[%c0_12, %c0_13] : memref<1x32xf32, #tpu.memory_space<vmem>>, vector<1x32xf32>
      %14 = vector.broadcast %13 : vector<1x32xf32> to vector<16x32xf32>
      %15 = arith.addf %12, %14 : vector<16x32xf32>
      %c0_14 = arith.constant 0 : index
      %c0_15 = arith.constant 0 : index
      %16 = vector.load %arg5[%c0_14, %c0_15] : memref<16x32xbf16, #tpu.memory_space<vmem>>, vector<16x32xbf16>
      %17 = arith.extf %16 : vector<16x32xbf16> to vector<16x32xf32>
      %18 = arith.addf %15, %17 : vector<16x32xf32>
      %cst_16 = arith.constant dense<0.000000e+00> : vector<16xf32>
      %19 = vector.multi_reduction <add>, %18, %cst_16 [1] : vector<16x32xf32> to vector<16xf32>
      %20 = vector.shape_cast %19 : vector<16xf32> to vector<16x1xf32>
      %cst_17 = arith.constant 3.200000e+01 : f32
      %21 = vector.broadcast %cst_17 : f32 to vector<16x1xf32>
      %22 = arith.divf %20, %21 : vector<16x1xf32>
      %23 = vector.broadcast %22 : vector<16x1xf32> to vector<16x32xf32>
      %24 = arith.subf %18, %23 : vector<16x32xf32>
      %25 = arith.mulf %24, %24 : vector<16x32xf32>
      %cst_18 = arith.constant dense<0.000000e+00> : vector<16xf32>
      %26 = vector.multi_reduction <add>, %25, %cst_18 [1] : vector<16x32xf32> to vector<16xf32>
      %27 = vector.shape_cast %26 : vector<16xf32> to vector<16x1xf32>
      %cst_19 = arith.constant 3.200000e+01 : f32
      %28 = vector.broadcast %cst_19 : f32 to vector<16x1xf32>
      %29 = arith.divf %27, %28 : vector<16x1xf32>
      %30 = vector.broadcast %22 : vector<16x1xf32> to vector<16x32xf32>
      %31 = arith.subf %18, %30 : vector<16x32xf32>
      %cst_20 = arith.constant 9.99999974E-6 : f32
      %32 = vector.broadcast %cst_20 : f32 to vector<16x1xf32>
      %33 = arith.addf %29, %32 : vector<16x1xf32>
      %34 = math.rsqrt %33 : vector<16x1xf32>
      %35 = vector.broadcast %34 : vector<16x1xf32> to vector<16x32xf32>
      %36 = arith.mulf %31, %35 : vector<16x32xf32>
      %c0_21 = arith.constant 0 : index
      %c0_22 = arith.constant 0 : index
      %37 = vector.load %arg6[%c0_21, %c0_22] : memref<1x32xf32, #tpu.memory_space<vmem>>, vector<1x32xf32>
      %38 = vector.broadcast %37 : vector<1x32xf32> to vector<16x32xf32>
      %39 = arith.mulf %36, %38 : vector<16x32xf32>
      %c0_23 = arith.constant 0 : index
      %c0_24 = arith.constant 0 : index
      %40 = vector.load %arg7[%c0_23, %c0_24] : memref<1x32xf32, #tpu.memory_space<vmem>>, vector<1x32xf32>
      %41 = vector.broadcast %40 : vector<1x32xf32> to vector<16x32xf32>
      %42 = arith.addf %39, %41 : vector<16x32xf32>
      %43 = arith.truncf %42 : vector<16x32xf32> to vector<16x32xbf16>
      %c0_25 = arith.constant 0 : index
      %c0_26 = arith.constant 0 : index
      %44 = vector.load %arg8[%c0_25, %c0_26] : memref<16x32xbf16, #tpu.memory_space<vmem>>, vector<16x32xbf16>
      tpu.vector_store %arg8[%c0_25, %c0_26], %43 {strides = array<i32>} : memref<16x32xbf16, #tpu.memory_space<vmem>>, vector<16x32xbf16>,
    } else {
    }
    return
  }
  func.func @transform_0(%arg0: i32, %arg1: i32) -> (i32, i32) {
    %c0_i32 = arith.constant 0 : i32
    return %arg0, %arg1 : i32, i32
  }
  func.func @transform_1(%arg0: i32, %arg1: i32) -> (i32, i32) {
    %c0_i32 = arith.constant 0 : i32
    %c0_i32_0 = arith.constant 0 : i32
    return %arg1, %c0_i32 : i32, i32
  }
  func.func @transform_2(%arg0: i32, %arg1: i32) -> (i32, i32) {
    %c0_i32 = arith.constant 0 : i32
    %c0_i32_0 = arith.constant 0 : i32
    %c0_i32_1 = arith.constant 0 : i32
    return %c0_i32, %c0_i32_0 : i32, i32
  }
  func.func @transform_3(%arg0: i32, %arg1: i32) -> (i32, i32) {
    %c0_i32 = arith.constant 0 : i32
    %c0_i32_0 = arith.constant 0 : i32
    return %arg0, %c0_i32 : i32, i32
  }
  func.func @transform_4(%arg0: i32, %arg1: i32) -> (i32, i32) {
    %c0_i32 = arith.constant 0 : i32
    %c0_i32_0 = arith.constant 0 : i32
    %c0_i32_1 = arith.constant 0 : i32
    return %c0_i32, %c0_i32_0 : i32, i32
  }
  func.func @transform_5(%arg0: i32, %arg1: i32) -> (i32, i32) {
    %c0_i32 = arith.constant 0 : i32
    %c0_i32_0 = arith.constant 0 : i32
    %c0_i32_1 = arith.constant 0 : i32
    return %c0_i32, %c0_i32_0 : i32, i32
  }
  func.func @transform_6(%arg0: i32, %arg1: i32) -> (i32, i32) {
    %c0_i32 = arith.constant 0 : i32
    %c0_i32_0 = arith.constant 0 : i32
    return %arg0, %c0_i32 : i32, i32
  }
}

module attributes {stable_mosaic.version = 11 : i64} {
  func.func @_matmul_add_ln_kernel(%arg0: i32, %arg1: i32, %arg2: memref<16x64xbf16, #tpu.memory_space<vmem>>, %arg3: memref<64x32xbf16, #tpu.memory_space<vmem>>, %arg4: memref<1x32xf32, #tpu.memory_space<vmem>>, %arg5: memref<16x32xbf16, #tpu.memory_space<vmem>>, %arg6: memref<1x32xf32, #tpu.memory_space<vmem>>, %arg7: memref<1x32xf32, #tpu.memory_space<vmem>>, %arg8: memref<16x32xbf16, #tpu.memory_space<vmem>>, %arg9: memref<16x32xf32, #tpu.memory_space<vmem>>) attributes {dimension_semantics = [#tpu.dimension_semantics<parallel>, #tpu.dimension_semantics<arbitrary>], iteration_bounds = array<i64: 1, 1>, scalar_prefetch = 0 : i64, scratch_operands = 1 : i64, tpu.core_type = #tpu.core_type<tc>, window_params = [{transform_indices = @transform_0, window_bounds = array<i64: 16, 64>}, {transform_indices = @transform_1, window_bounds = array<i64: 64, 32>}, {pipeline_mode = #tpu.pipeline_mode<synchronous>, transform_indices = @transform_2, window_bounds = array<i64: 1, 32>}, {transform_indices = @transform_3, window_bounds = array<i64: 16, 32>}, {pipeline_mode = #tpu.pipeline_mode<synchronous>, transform_indices = @transform_4, window_bounds = array<i64: 1, 32>}, {pipeline_mode = #tpu.pipeline_mode<synchronous>, transform_indices = @transform_5, window_bounds = array<i64: 1, 32>}, {transform_indices = @transform_6, window_bounds = array<i64: 16, 32>}]} {
    %c0_i32 = arith.constant 0 : i32
    %0 = arith.cmpi eq, %arg1, %c0_i32 : i32
    %1 = arith.extui %0 : i1 to i32
    %c0_i32_0 = arith.constant 0 : i32
    %2 = arith.cmpi ne, %1, %c0_i32_0 : i32
    scf.if %2 {
      %cst_10 = arith.constant 0.000000e+00 : f32
      %12 = vector.broadcast %cst_10 : f32 to vector<16x32xf32>
      %c0_11 = arith.constant 0 : index
      %c0_12 = arith.constant 0 : index
      %13 = vector.load %arg9[%c0_11, %c0_12] : memref<16x32xf32, #tpu.memory_space<vmem>>, vector<16x32xf32>
      tpu.vector_store %arg9[%c0_11, %c0_12], %12 {strides = array<i32>} : memref<16x32xf32, #tpu.memory_space<vmem>>, vector<16x32xf32>,
    } else {
    }
    %c0 = arith.constant 0 : index
    %c0_1 = arith.constant 0 : index
    %3 = vector.load %arg9[%c0, %c0_1] : memref<16x32xf32, #tpu.memory_space<vmem>>, vector<16x32xf32>
    %c0_2 = arith.constant 0 : index
    %c0_3 = arith.constant 0 : index
    %4 = vector.load %arg2[%c0_2, %c0_3] : memref<16x64xbf16, #tpu.memory_space<vmem>>, vector<16x64xbf16>
    %c0_4 = arith.constant 0 : index
    %c0_5 = arith.constant 0 : index
    %5 = vector.load %arg3[%c0_4, %c0_5] : memref<64x32xbf16, #tpu.memory_space<vmem>>, vector<64x32xbf16>
    %cst = arith.constant dense<0.000000e+00> : vector<16x32xf32>
    %6 = tpu.matmul %4, %5, %cst {dimension_numbers = #tpu.dot_dimension_numbers<[1], [0], [0], [1], [0, 0, 1, 1], [], []>} : vector<16x64xbf16>, vector<64x32xbf16>, vector<16x32xf32> -> vector<16x32xf32>
    %7 = arith.addf %3, %6 : vector<16x32xf32>
    %c0_6 = arith.constant 0 : index
    %c0_7 = arith.constant 0 : index
    %8 = vector.load %arg9[%c0_6, %c0_7] : memref<16x32xf32, #tpu.memory_space<vmem>>, vector<16x32xf32>
    tpu.vector_store %arg9[%c0_6, %c0_7], %7 {strides = array<i32>} : memref<16x32xf32, #tpu.memory_space<vmem>>, vector<16x32xf32>,
    %c0_i32_8 = arith.constant 0 : i32
    %9 = arith.cmpi eq, %arg1, %c0_i32_8 : i32
    %10 = arith.extui %9 : i1 to i32
    %c0_i32_9 = arith.constant 0 : i32
    %11 = arith.cmpi ne, %10, %c0_i32_9 : i32
    scf.if %11 {
      %c0_10 = arith.constant 0 : index
      %c0_11 = arith.constant 0 : index
      %12 = vector.load %arg9[%c0_10, %c0_11] : memref<16x32xf32, #tpu.memory_space<vmem>>, vector<16x32xf32>
      %c0_12 = arith.constant 0 : index
      %c0_13 = arith.constant 0 : index
      %13 = vector.load %arg4[%c0_12, %c0_13] : memref<1x32xf32, #tpu.memory_space<vmem>>, vector<1x32xf32>
      %14 = vector.broadcast %13 : vector<1x32xf32> to vector<16x32xf32>
      %15 = arith.addf %12, %14 : vector<16x32xf32>
      %c0_14 = arith.constant 0 : index
      %c0_15 = arith.constant 0 : index
      %16 = vector.load %arg5[%c0_14, %c0_15] : memref<16x32xbf16, #tpu.memory_space<vmem>>, vector<16x32xbf16>
      %17 = arith.extf %16 : vector<16x32xbf16> to vector<16x32xf32>
      %18 = arith.addf %15, %17 : vector<16x32xf32>
      %cst_16 = arith.constant dense<0.000000e+00> : vector<16xf32>
      %19 = vector.multi_reduction <add>, %18, %cst_16 [1] : vector<16x32xf32> to vector<16xf32>
      %20 = vector.shape_cast %19 : vector<16xf32> to vector<16x1xf32>
      %cst_17 = arith.constant 3.200000e+01 : f32
      %21 = vector.broadcast %cst_17 : f32 to vector<16x1xf32>
      %22 = arith.divf %20, %21 : vector<16x1xf32>
      %23 = vector.broadcast %22 : vector<16x1xf32> to vector<16x32xf32>
      %24 = arith.subf %18, %23 : vector<16x32xf32>
      %25 = arith.mulf %24, %24 : vector<16x32xf32>
      %cst_18 = arith.constant dense<0.000000e+00> : vector<16xf32>
      %26 = vector.multi_reduction <add>, %25, %cst_18 [1] : vector<16x32xf32> to vector<16xf32>
      %27 = vector.shape_cast %26 : vector<16xf32> to vector<16x1xf32>
      %cst_19 = arith.constant 3.200000e+01 : f32
      %28 = vector.broadcast %cst_19 : f32 to vector<16x1xf32>
      %29 = arith.divf %27, %28 : vector<16x1xf32>
      %30 = vector.broadcast %22 : vector<16x1xf32> to vector<16x32xf32>
      %31 = arith.subf %18, %30 : vector<16x32xf32>
      %cst_20 = arith.constant 9.99999974E-6 : f32
      %32 = vector.broadcast %cst_20 : f32 to vector<16x1xf32>
      %33 = arith.addf %29, %32 : vector<16x1xf32>
      %34 = math.rsqrt %33 : vector<16x1xf32>
      %35 = vector.broadcast %34 : vector<16x1xf32> to vector<16x32xf32>
      %36 = arith.mulf %31, %35 : vector<16x32xf32>
      %c0_21 = arith.constant 0 : index
      %c0_22 = arith.constant 0 : index
      %37 = vector.load %arg6[%c0_21, %c0_22] : memref<1x32xf32, #tpu.memory_space<vmem>>, vector<1x32xf32>
      %38 = vector.broadcast %37 : vector<1x32xf32> to vector<16x32xf32>
      %39 = arith.mulf %36, %38 : vector<16x32xf32>
      %c0_23 = arith.constant 0 : index
      %c0_24 = arith.constant 0 : index
      %40 = vector.load %arg7[%c0_23, %c0_24] : memref<1x32xf32, #tpu.memory_space<vmem>>, vector<1x32xf32>
      %41 = vector.broadcast %40 : vector<1x32xf32> to vector<16x32xf32>
      %42 = arith.addf %39, %41 : vector<16x32xf32>
      %43 = arith.truncf %42 : vector<16x32xf32> to vector<16x32xbf16>
      %c0_25 = arith.constant 0 : index
      %c0_26 = arith.constant 0 : index
      %44 = vector.load %arg8[%c0_25, %c0_26] : memref<16x32xbf16, #tpu.memory_space<vmem>>, vector<16x32xbf16>
      tpu.vector_store %arg8[%c0_25, %c0_26], %43 {strides = array<i32>} : memref<16x32xbf16, #tpu.memory_space<vmem>>, vector<16x32xbf16>,
    } else {
    }
    return
  }
  func.func @transform_0(%arg0: i32, %arg1: i32) -> (i32, i32) {
    %c0_i32 = arith.constant 0 : i32
    return %arg0, %arg1 : i32, i32
  }
  func.func @transform_1(%arg0: i32, %arg1: i32) -> (i32, i32) {
    %c0_i32 = arith.constant 0 : i32
    %c0_i32_0 = arith.constant 0 : i32
    return %arg1, %c0_i32 : i32, i32
  }
  func.func @transform_2(%arg0: i32, %arg1: i32) -> (i32, i32) {
    %c0_i32 = arith.constant 0 : i32
    %c0_i32_0 = arith.constant 0 : i32
    %c0_i32_1 = arith.constant 0 : i32
    return %c0_i32, %c0_i32_0 : i32, i32
  }
  func.func @transform_3(%arg0: i32, %arg1: i32) -> (i32, i32) {
    %c0_i32 = arith.constant 0 : i32
    %c0_i32_0 = arith.constant 0 : i32
    return %arg0, %c0_i32 : i32, i32
  }
  func.func @transform_4(%arg0: i32, %arg1: i32) -> (i32, i32) {
    %c0_i32 = arith.constant 0 : i32
    %c0_i32_0 = arith.constant 0 : i32
    %c0_i32_1 = arith.constant 0 : i32
    return %c0_i32, %c0_i32_0 : i32, i32
  }
  func.func @transform_5(%arg0: i32, %arg1: i32) -> (i32, i32) {
    %c0_i32 = arith.constant 0 : i32
    %c0_i32_0 = arith.constant 0 : i32
    %c0_i32_1 = arith.constant 0 : i32
    return %c0_i32, %c0_i32_0 : i32, i32
  }
  func.func @transform_6(%arg0: i32, %arg1: i32) -> (i32, i32) {
    %c0_i32 = arith.constant 0 : i32
    %c0_i32_0 = arith.constant 0 : i32
    return %arg0, %c0_i32 : i32, i32
  }
}

module attributes {stable_mosaic.version = 11 : i64} {
  func.func @_matmul_kernel(%arg0: i32, %arg1: i32, %arg2: i32, %arg3: memref<6x32xbf16, #tpu.memory_space<vmem>>, %arg4: memref<32x64xbf16, #tpu.memory_space<vmem>>, %arg5: memref<1x64xf32, #tpu.memory_space<vmem>>, %arg6: memref<6x64xf32, #tpu.memory_space<vmem>>, %arg7: memref<6x64xf32, #tpu.memory_space<vmem>>) attributes {dimension_semantics = [#tpu.dimension_semantics<parallel>, #tpu.dimension_semantics<parallel>, #tpu.dimension_semantics<arbitrary>], iteration_bounds = array<i64: 1, 1, 1>, scalar_prefetch = 0 : i64, scratch_operands = 1 : i64, tpu.core_type = #tpu.core_type<tc>, window_params = [{transform_indices = @transform_0, window_bounds = array<i64: 6, 32>}, {transform_indices = @transform_1, window_bounds = array<i64: 32, 64>}, {transform_indices = @transform_2, window_bounds = array<i64: 1, 64>}, {transform_indices = @transform_3, window_bounds = array<i64: 6, 64>}]} {
    %c0_i32 = arith.constant 0 : i32
    %0 = arith.cmpi eq, %arg2, %c0_i32 : i32
    %1 = arith.extui %0 : i1 to i32
    %c0_i32_0 = arith.constant 0 : i32
    %2 = arith.cmpi ne, %1, %c0_i32_0 : i32
    scf.if %2 {
      %cst_10 = arith.constant 0.000000e+00 : f32
      %12 = vector.broadcast %cst_10 : f32 to vector<6x64xf32>
      %c0_11 = arith.constant 0 : index
      %c0_12 = arith.constant 0 : index
      %13 = vector.load %arg7[%c0_11, %c0_12] : memref<6x64xf32, #tpu.memory_space<vmem>>, vector<6x64xf32>
      tpu.vector_store %arg7[%c0_11, %c0_12], %12 {strides = array<i32>} : memref<6x64xf32, #tpu.memory_space<vmem>>, vector<6x64xf32>,
    } else {
    }
    %c0 = arith.constant 0 : index
    %c0_1 = arith.constant 0 : index
    %3 = vector.load %arg7[%c0, %c0_1] : memref<6x64xf32, #tpu.memory_space<vmem>>, vector<6x64xf32>
    %c0_2 = arith.constant 0 : index
    %c0_3 = arith.constant 0 : index
    %4 = vector.load %arg3[%c0_2, %c0_3] : memref<6x32xbf16, #tpu.memory_space<vmem>>, vector<6x32xbf16>
    %c0_4 = arith.constant 0 : index
    %c0_5 = arith.constant 0 : index
    %5 = vector.load %arg4[%c0_4, %c0_5] : memref<32x64xbf16, #tpu.memory_space<vmem>>, vector<32x64xbf16>
    %cst = arith.constant dense<0.000000e+00> : vector<6x64xf32>
    %6 = tpu.matmul %4, %5, %cst {dimension_numbers = #tpu.dot_dimension_numbers<[1], [0], [0], [1], [0, 0, 1, 1], [], []>} : vector<6x32xbf16>, vector<32x64xbf16>, vector<6x64xf32> -> vector<6x64xf32>
    %7 = arith.addf %3, %6 : vector<6x64xf32>
    %c0_6 = arith.constant 0 : index
    %c0_7 = arith.constant 0 : index
    %8 = vector.load %arg7[%c0_6, %c0_7] : memref<6x64xf32, #tpu.memory_space<vmem>>, vector<6x64xf32>
    tpu.vector_store %arg7[%c0_6, %c0_7], %7 {strides = array<i32>} : memref<6x64xf32, #tpu.memory_space<vmem>>, vector<6x64xf32>,
    %c0_i32_8 = arith.constant 0 : i32
    %9 = arith.cmpi eq, %arg2, %c0_i32_8 : i32
    %10 = arith.extui %9 : i1 to i32
    %c0_i32_9 = arith.constant 0 : i32
    %11 = arith.cmpi ne, %10, %c0_i32_9 : i32
    scf.if %11 {
      %c0_10 = arith.constant 0 : index
      %c0_11 = arith.constant 0 : index
      %12 = vector.load %arg7[%c0_10, %c0_11] : memref<6x64xf32, #tpu.memory_space<vmem>>, vector<6x64xf32>
      %c0_12 = arith.constant 0 : index
      %c0_13 = arith.constant 0 : index
      %13 = vector.load %arg5[%c0_12, %c0_13] : memref<1x64xf32, #tpu.memory_space<vmem>>, vector<1x64xf32>
      %14 = vector.broadcast %13 : vector<1x64xf32> to vector<6x64xf32>
      %15 = arith.addf %12, %14 : vector<6x64xf32>
      %c0_14 = arith.constant 0 : index
      %c0_15 = arith.constant 0 : index
      %16 = vector.load %arg6[%c0_14, %c0_15] : memref<6x64xf32, #tpu.memory_space<vmem>>, vector<6x64xf32>
      tpu.vector_store %arg6[%c0_14, %c0_15], %15 {strides = array<i32>} : memref<6x64xf32, #tpu.memory_space<vmem>>, vector<6x64xf32>,
    } else {
    }
    return
  }
  func.func @transform_0(%arg0: i32, %arg1: i32, %arg2: i32) -> (i32, i32) {
    %c0_i32 = arith.constant 0 : i32
    return %arg0, %arg2 : i32, i32
  }
  func.func @transform_1(%arg0: i32, %arg1: i32, %arg2: i32) -> (i32, i32) {
    %c0_i32 = arith.constant 0 : i32
    return %arg2, %arg1 : i32, i32
  }
  func.func @transform_2(%arg0: i32, %arg1: i32, %arg2: i32) -> (i32, i32) {
    %c0_i32 = arith.constant 0 : i32
    %c0_i32_0 = arith.constant 0 : i32
    return %c0_i32, %arg1 : i32, i32
  }
  func.func @transform_3(%arg0: i32, %arg1: i32, %arg2: i32) -> (i32, i32) {
    %c0_i32 = arith.constant 0 : i32
    return %arg0, %arg1 : i32, i32
  }
}

module attributes {stable_mosaic.version = 11 : i64} {
  func.func @_matmul_kernel(%arg0: i32, %arg1: i32, %arg2: i32, %arg3: memref<2x32xbf16, #tpu.memory_space<vmem>>, %arg4: memref<32x32xbf16, #tpu.memory_space<vmem>>, %arg5: memref<1x32xf32, #tpu.memory_space<vmem>>, %arg6: memref<2x32xbf16, #tpu.memory_space<vmem>>, %arg7: memref<2x32xf32, #tpu.memory_space<vmem>>) attributes {dimension_semantics = [#tpu.dimension_semantics<parallel>, #tpu.dimension_semantics<parallel>, #tpu.dimension_semantics<arbitrary>], iteration_bounds = array<i64: 1, 1, 1>, scalar_prefetch = 0 : i64, scratch_operands = 1 : i64, tpu.core_type = #tpu.core_type<tc>, window_params = [{transform_indices = @transform_0, window_bounds = array<i64: 2, 32>}, {transform_indices = @transform_1, window_bounds = array<i64: 32, 32>}, {transform_indices = @transform_2, window_bounds = array<i64: 1, 32>}, {transform_indices = @transform_3, window_bounds = array<i64: 2, 32>}]} {
    %c0_i32 = arith.constant 0 : i32
    %0 = arith.cmpi eq, %arg2, %c0_i32 : i32
    %1 = arith.extui %0 : i1 to i32
    %c0_i32_0 = arith.constant 0 : i32
    %2 = arith.cmpi ne, %1, %c0_i32_0 : i32
    scf.if %2 {
      %cst_10 = arith.constant 0.000000e+00 : f32
      %12 = vector.broadcast %cst_10 : f32 to vector<2x32xf32>
      %c0_11 = arith.constant 0 : index
      %c0_12 = arith.constant 0 : index
      %13 = vector.load %arg7[%c0_11, %c0_12] : memref<2x32xf32, #tpu.memory_space<vmem>>, vector<2x32xf32>
      tpu.vector_store %arg7[%c0_11, %c0_12], %12 {strides = array<i32>} : memref<2x32xf32, #tpu.memory_space<vmem>>, vector<2x32xf32>,
    } else {
    }
    %c0 = arith.constant 0 : index
    %c0_1 = arith.constant 0 : index
    %3 = vector.load %arg7[%c0, %c0_1] : memref<2x32xf32, #tpu.memory_space<vmem>>, vector<2x32xf32>
    %c0_2 = arith.constant 0 : index
    %c0_3 = arith.constant 0 : index
    %4 = vector.load %arg3[%c0_2, %c0_3] : memref<2x32xbf16, #tpu.memory_space<vmem>>, vector<2x32xbf16>
    %c0_4 = arith.constant 0 : index
    %c0_5 = arith.constant 0 : index
    %5 = vector.load %arg4[%c0_4, %c0_5] : memref<32x32xbf16, #tpu.memory_space<vmem>>, vector<32x32xbf16>
    %cst = arith.constant dense<0.000000e+00> : vector<2x32xf32>
    %6 = tpu.matmul %4, %5, %cst {dimension_numbers = #tpu.dot_dimension_numbers<[1], [0], [0], [1], [0, 0, 1, 1], [], []>} : vector<2x32xbf16>, vector<32x32xbf16>, vector<2x32xf32> -> vector<2x32xf32>
    %7 = arith.addf %3, %6 : vector<2x32xf32>
    %c0_6 = arith.constant 0 : index
    %c0_7 = arith.constant 0 : index
    %8 = vector.load %arg7[%c0_6, %c0_7] : memref<2x32xf32, #tpu.memory_space<vmem>>, vector<2x32xf32>
    tpu.vector_store %arg7[%c0_6, %c0_7], %7 {strides = array<i32>} : memref<2x32xf32, #tpu.memory_space<vmem>>, vector<2x32xf32>,
    %c0_i32_8 = arith.constant 0 : i32
    %9 = arith.cmpi eq, %arg2, %c0_i32_8 : i32
    %10 = arith.extui %9 : i1 to i32
    %c0_i32_9 = arith.constant 0 : i32
    %11 = arith.cmpi ne, %10, %c0_i32_9 : i32
    scf.if %11 {
      %c0_10 = arith.constant 0 : index
      %c0_11 = arith.constant 0 : index
      %12 = vector.load %arg7[%c0_10, %c0_11] : memref<2x32xf32, #tpu.memory_space<vmem>>, vector<2x32xf32>
      %c0_12 = arith.constant 0 : index
      %c0_13 = arith.constant 0 : index
      %13 = vector.load %arg5[%c0_12, %c0_13] : memref<1x32xf32, #tpu.memory_space<vmem>>, vector<1x32xf32>
      %14 = vector.broadcast %13 : vector<1x32xf32> to vector<2x32xf32>
      %15 = arith.addf %12, %14 : vector<2x32xf32>
      %16 = math.tanh %15 : vector<2x32xf32>
      %17 = arith.truncf %16 : vector<2x32xf32> to vector<2x32xbf16>
      %c0_14 = arith.constant 0 : index
      %c0_15 = arith.constant 0 : index
      %18 = vector.load %arg6[%c0_14, %c0_15] : memref<2x32xbf16, #tpu.memory_space<vmem>>, vector<2x32xbf16>
      tpu.vector_store %arg6[%c0_14, %c0_15], %17 {strides = array<i32>} : memref<2x32xbf16, #tpu.memory_space<vmem>>, vector<2x32xbf16>,
    } else {
    }
    return
  }
  func.func @transform_0(%arg0: i32, %arg1: i32, %arg2: i32) -> (i32, i32) {
    %c0_i32 = arith.constant 0 : i32
    return %arg0, %arg2 : i32, i32
  }
  func.func @transform_1(%arg0: i32, %arg1: i32, %arg2: i32) -> (i32, i32) {
    %c0_i32 = arith.constant 0 : i32
    return %arg2, %arg1 : i32, i32
  }
  func.func @transform_2(%arg0: i32, %arg1: i32, %arg2: i32) -> (i32, i32) {
    %c0_i32 = arith.constant 0 : i32
    %c0_i32_0 = arith.constant 0 : i32
    return %c0_i32, %arg1 : i32, i32
  }
  func.func @transform_3(%arg0: i32, %arg1: i32, %arg2: i32) -> (i32, i32) {
    %c0_i32 = arith.constant 0 : i32
    return %arg0, %arg1 : i32, i32
  }
}

module attributes {stable_mosaic.version = 11 : i64} {
  func.func @_matmul_nores_ln_kernel(%arg0: i32, %arg1: i32, %arg2: memref<6x32xbf16, #tpu.memory_space<vmem>>, %arg3: memref<32x32xbf16, #tpu.memory_space<vmem>>, %arg4: memref<1x32xf32, #tpu.memory_space<vmem>>, %arg5: memref<1x32xf32, #tpu.memory_space<vmem>>, %arg6: memref<1x32xf32, #tpu.memory_space<vmem>>, %arg7: memref<6x32xbf16, #tpu.memory_space<vmem>>, %arg8: memref<6x32xf32, #tpu.memory_space<vmem>>) attributes {dimension_semantics = [#tpu.dimension_semantics<parallel>, #tpu.dimension_semantics<arbitrary>], iteration_bounds = array<i64: 1, 1>, scalar_prefetch = 0 : i64, scratch_operands = 1 : i64, tpu.core_type = #tpu.core_type<tc>, window_params = [{transform_indices = @transform_0, window_bounds = array<i64: 6, 32>}, {transform_indices = @transform_1, window_bounds = array<i64: 32, 32>}, {pipeline_mode = #tpu.pipeline_mode<synchronous>, transform_indices = @transform_2, window_bounds = array<i64: 1, 32>}, {pipeline_mode = #tpu.pipeline_mode<synchronous>, transform_indices = @transform_3, window_bounds = array<i64: 1, 32>}, {pipeline_mode = #tpu.pipeline_mode<synchronous>, transform_indices = @transform_4, window_bounds = array<i64: 1, 32>}, {transform_indices = @transform_5, window_bounds = array<i64: 6, 32>}]} {
    %c0_i32 = arith.constant 0 : i32
    %0 = arith.cmpi eq, %arg1, %c0_i32 : i32
    %1 = arith.extui %0 : i1 to i32
    %c0_i32_0 = arith.constant 0 : i32
    %2 = arith.cmpi ne, %1, %c0_i32_0 : i32
    scf.if %2 {
      %cst_10 = arith.constant 0.000000e+00 : f32
      %12 = vector.broadcast %cst_10 : f32 to vector<6x32xf32>
      %c0_11 = arith.constant 0 : index
      %c0_12 = arith.constant 0 : index
      %13 = vector.load %arg8[%c0_11, %c0_12] : memref<6x32xf32, #tpu.memory_space<vmem>>, vector<6x32xf32>
      tpu.vector_store %arg8[%c0_11, %c0_12], %12 {strides = array<i32>} : memref<6x32xf32, #tpu.memory_space<vmem>>, vector<6x32xf32>,
    } else {
    }
    %c0 = arith.constant 0 : index
    %c0_1 = arith.constant 0 : index
    %3 = vector.load %arg8[%c0, %c0_1] : memref<6x32xf32, #tpu.memory_space<vmem>>, vector<6x32xf32>
    %c0_2 = arith.constant 0 : index
    %c0_3 = arith.constant 0 : index
    %4 = vector.load %arg2[%c0_2, %c0_3] : memref<6x32xbf16, #tpu.memory_space<vmem>>, vector<6x32xbf16>
    %c0_4 = arith.constant 0 : index
    %c0_5 = arith.constant 0 : index
    %5 = vector.load %arg3[%c0_4, %c0_5] : memref<32x32xbf16, #tpu.memory_space<vmem>>, vector<32x32xbf16>
    %cst = arith.constant dense<0.000000e+00> : vector<6x32xf32>
    %6 = tpu.matmul %4, %5, %cst {dimension_numbers = #tpu.dot_dimension_numbers<[1], [0], [0], [1], [0, 0, 1, 1], [], []>} : vector<6x32xbf16>, vector<32x32xbf16>, vector<6x32xf32> -> vector<6x32xf32>
    %7 = arith.addf %3, %6 : vector<6x32xf32>
    %c0_6 = arith.constant 0 : index
    %c0_7 = arith.constant 0 : index
    %8 = vector.load %arg8[%c0_6, %c0_7] : memref<6x32xf32, #tpu.memory_space<vmem>>, vector<6x32xf32>
    tpu.vector_store %arg8[%c0_6, %c0_7], %7 {strides = array<i32>} : memref<6x32xf32, #tpu.memory_space<vmem>>, vector<6x32xf32>,
    %c0_i32_8 = arith.constant 0 : i32
    %9 = arith.cmpi eq, %arg1, %c0_i32_8 : i32
    %10 = arith.extui %9 : i1 to i32
    %c0_i32_9 = arith.constant 0 : i32
    %11 = arith.cmpi ne, %10, %c0_i32_9 : i32
    scf.if %11 {
      %c0_10 = arith.constant 0 : index
      %c0_11 = arith.constant 0 : index
      %12 = vector.load %arg8[%c0_10, %c0_11] : memref<6x32xf32, #tpu.memory_space<vmem>>, vector<6x32xf32>
      %c0_12 = arith.constant 0 : index
      %c0_13 = arith.constant 0 : index
      %13 = vector.load %arg4[%c0_12, %c0_13] : memref<1x32xf32, #tpu.memory_space<vmem>>, vector<1x32xf32>
      %14 = vector.broadcast %13 : vector<1x32xf32> to vector<6x32xf32>
      %15 = arith.addf %12, %14 : vector<6x32xf32>
      %cst_14 = arith.constant 0.000000e+00 : f32
      %16 = vector.broadcast %cst_14 : f32 to vector<6x32xf32>
      %17 = arith.maximumf %15, %16 : vector<6x32xf32>
      %cst_15 = arith.constant dense<0.000000e+00> : vector<6xf32>
      %18 = vector.multi_reduction <add>, %17, %cst_15 [1] : vector<6x32xf32> to vector<6xf32>
      %19 = vector.shape_cast %18 : vector<6xf32> to vector<6x1xf32>
      %cst_16 = arith.constant 3.200000e+01 : f32
      %20 = vector.broadcast %cst_16 : f32 to vector<6x1xf32>
      %21 = arith.divf %19, %20 : vector<6x1xf32>
      %22 = vector.broadcast %21 : vector<6x1xf32> to vector<6x32xf32>
      %23 = arith.subf %17, %22 : vector<6x32xf32>
      %24 = arith.mulf %23, %23 : vector<6x32xf32>
      %cst_17 = arith.constant dense<0.000000e+00> : vector<6xf32>
      %25 = vector.multi_reduction <add>, %24, %cst_17 [1] : vector<6x32xf32> to vector<6xf32>
      %26 = vector.shape_cast %25 : vector<6xf32> to vector<6x1xf32>
      %cst_18 = arith.constant 3.200000e+01 : f32
      %27 = vector.broadcast %cst_18 : f32 to vector<6x1xf32>
      %28 = arith.divf %26, %27 : vector<6x1xf32>
      %29 = vector.broadcast %21 : vector<6x1xf32> to vector<6x32xf32>
      %30 = arith.subf %17, %29 : vector<6x32xf32>
      %cst_19 = arith.constant 9.99999974E-6 : f32
      %31 = vector.broadcast %cst_19 : f32 to vector<6x1xf32>
      %32 = arith.addf %28, %31 : vector<6x1xf32>
      %33 = math.rsqrt %32 : vector<6x1xf32>
      %34 = vector.broadcast %33 : vector<6x1xf32> to vector<6x32xf32>
      %35 = arith.mulf %30, %34 : vector<6x32xf32>
      %c0_20 = arith.constant 0 : index
      %c0_21 = arith.constant 0 : index
      %36 = vector.load %arg5[%c0_20, %c0_21] : memref<1x32xf32, #tpu.memory_space<vmem>>, vector<1x32xf32>
      %37 = vector.broadcast %36 : vector<1x32xf32> to vector<6x32xf32>
      %38 = arith.mulf %35, %37 : vector<6x32xf32>
      %c0_22 = arith.constant 0 : index
      %c0_23 = arith.constant 0 : index
      %39 = vector.load %arg6[%c0_22, %c0_23] : memref<1x32xf32, #tpu.memory_space<vmem>>, vector<1x32xf32>
      %40 = vector.broadcast %39 : vector<1x32xf32> to vector<6x32xf32>
      %41 = arith.addf %38, %40 : vector<6x32xf32>
      %42 = arith.truncf %41 : vector<6x32xf32> to vector<6x32xbf16>
      %c0_24 = arith.constant 0 : index
      %c0_25 = arith.constant 0 : index
      %43 = vector.load %arg7[%c0_24, %c0_25] : memref<6x32xbf16, #tpu.memory_space<vmem>>, vector<6x32xbf16>
      tpu.vector_store %arg7[%c0_24, %c0_25], %42 {strides = array<i32>} : memref<6x32xbf16, #tpu.memory_space<vmem>>, vector<6x32xbf16>,
    } else {
    }
    return
  }
  func.func @transform_0(%arg0: i32, %arg1: i32) -> (i32, i32) {
    %c0_i32 = arith.constant 0 : i32
    return %arg0, %arg1 : i32, i32
  }
  func.func @transform_1(%arg0: i32, %arg1: i32) -> (i32, i32) {
    %c0_i32 = arith.constant 0 : i32
    %c0_i32_0 = arith.constant 0 : i32
    return %arg1, %c0_i32 : i32, i32
  }
  func.func @transform_2(%arg0: i32, %arg1: i32) -> (i32, i32) {
    %c0_i32 = arith.constant 0 : i32
    %c0_i32_0 = arith.constant 0 : i32
    %c0_i32_1 = arith.constant 0 : i32
    return %c0_i32, %c0_i32_0 : i32, i32
  }
  func.func @transform_3(%arg0: i32, %arg1: i32) -> (i32, i32) {
    %c0_i32 = arith.constant 0 : i32
    %c0_i32_0 = arith.constant 0 : i32
    %c0_i32_1 = arith.constant 0 : i32
    return %c0_i32, %c0_i32_0 : i32, i32
  }
  func.func @transform_4(%arg0: i32, %arg1: i32) -> (i32, i32) {
    %c0_i32 = arith.constant 0 : i32
    %c0_i32_0 = arith.constant 0 : i32
    %c0_i32_1 = arith.constant 0 : i32
    return %c0_i32, %c0_i32_0 : i32, i32
  }
  func.func @transform_5(%arg0: i32, %arg1: i32) -> (i32, i32) {
    %c0_i32 = arith.constant 0 : i32
    %c0_i32_0 = arith.constant 0 : i32
    return %arg0, %c0_i32 : i32, i32
  }
}

module attributes {stable_mosaic.version = 11 : i64} {
  func.func @_matmul_kernel(%arg0: i32, %arg1: i32, %arg2: i32, %arg3: memref<2x32xbf16, #tpu.memory_space<vmem>>, %arg4: memref<32x2xbf16, #tpu.memory_space<vmem>>, %arg5: memref<1x2xf32, #tpu.memory_space<vmem>>, %arg6: memref<2x2xf32, #tpu.memory_space<vmem>>, %arg7: memref<2x2xf32, #tpu.memory_space<vmem>>) attributes {dimension_semantics = [#tpu.dimension_semantics<parallel>, #tpu.dimension_semantics<parallel>, #tpu.dimension_semantics<arbitrary>], iteration_bounds = array<i64: 1, 1, 1>, scalar_prefetch = 0 : i64, scratch_operands = 1 : i64, tpu.core_type = #tpu.core_type<tc>, window_params = [{transform_indices = @transform_0, window_bounds = array<i64: 2, 32>}, {transform_indices = @transform_1, window_bounds = array<i64: 32, 2>}, {transform_indices = @transform_2, window_bounds = array<i64: 1, 2>}, {transform_indices = @transform_3, window_bounds = array<i64: 2, 2>}]} {
    %c0_i32 = arith.constant 0 : i32
    %0 = arith.cmpi eq, %arg2, %c0_i32 : i32
    %1 = arith.extui %0 : i1 to i32
    %c0_i32_0 = arith.constant 0 : i32
    %2 = arith.cmpi ne, %1, %c0_i32_0 : i32
    scf.if %2 {
      %cst_10 = arith.constant 0.000000e+00 : f32
      %12 = vector.broadcast %cst_10 : f32 to vector<2x2xf32>
      %c0_11 = arith.constant 0 : index
      %c0_12 = arith.constant 0 : index
      %13 = vector.load %arg7[%c0_11, %c0_12] : memref<2x2xf32, #tpu.memory_space<vmem>>, vector<2x2xf32>
      tpu.vector_store %arg7[%c0_11, %c0_12], %12 {strides = array<i32>} : memref<2x2xf32, #tpu.memory_space<vmem>>, vector<2x2xf32>,
    } else {
    }
    %c0 = arith.constant 0 : index
    %c0_1 = arith.constant 0 : index
    %3 = vector.load %arg7[%c0, %c0_1] : memref<2x2xf32, #tpu.memory_space<vmem>>, vector<2x2xf32>
    %c0_2 = arith.constant 0 : index
    %c0_3 = arith.constant 0 : index
    %4 = vector.load %arg3[%c0_2, %c0_3] : memref<2x32xbf16, #tpu.memory_space<vmem>>, vector<2x32xbf16>
    %c0_4 = arith.constant 0 : index
    %c0_5 = arith.constant 0 : index
    %5 = vector.load %arg4[%c0_4, %c0_5] : memref<32x2xbf16, #tpu.memory_space<vmem>>, vector<32x2xbf16>
    %cst = arith.constant dense<0.000000e+00> : vector<2x2xf32>
    %6 = tpu.matmul %4, %5, %cst {dimension_numbers = #tpu.dot_dimension_numbers<[1], [0], [0], [1], [0, 0, 1, 1], [], []>} : vector<2x32xbf16>, vector<32x2xbf16>, vector<2x2xf32> -> vector<2x2xf32>
    %7 = arith.addf %3, %6 : vector<2x2xf32>
    %c0_6 = arith.constant 0 : index
    %c0_7 = arith.constant 0 : index
    %8 = vector.load %arg7[%c0_6, %c0_7] : memref<2x2xf32, #tpu.memory_space<vmem>>, vector<2x2xf32>
    tpu.vector_store %arg7[%c0_6, %c0_7], %7 {strides = array<i32>} : memref<2x2xf32, #tpu.memory_space<vmem>>, vector<2x2xf32>,
    %c0_i32_8 = arith.constant 0 : i32
    %9 = arith.cmpi eq, %arg2, %c0_i32_8 : i32
    %10 = arith.extui %9 : i1 to i32
    %c0_i32_9 = arith.constant 0 : i32
    %11 = arith.cmpi ne, %10, %c0_i32_9 : i32
    scf.if %11 {
      %c0_10 = arith.constant 0 : index
      %c0_11 = arith.constant 0 : index
      %12 = vector.load %arg7[%c0_10, %c0_11] : memref<2x2xf32, #tpu.memory_space<vmem>>, vector<2x2xf32>
      %c0_12 = arith.constant 0 : index
      %c0_13 = arith.constant 0 : index
      %13 = vector.load %arg5[%c0_12, %c0_13] : memref<1x2xf32, #tpu.memory_space<vmem>>, vector<1x2xf32>
      %14 = vector.broadcast %13 : vector<1x2xf32> to vector<2x2xf32>
      %15 = arith.addf %12, %14 : vector<2x2xf32>
      %c0_14 = arith.constant 0 : index
      %c0_15 = arith.constant 0 : index
      %16 = vector.load %arg6[%c0_14, %c0_15] : memref<2x2xf32, #tpu.memory_space<vmem>>, vector<2x2xf32>
      tpu.vector_store %arg6[%c0_14, %c0_15], %15 {strides = array<i32>} : memref<2x2xf32, #tpu.memory_space<vmem>>, vector<2x2xf32>,
    } else {
    }
    return
  }
  func.func @transform_0(%arg0: i32, %arg1: i32, %arg2: i32) -> (i32, i32) {
    %c0_i32 = arith.constant 0 : i32
    return %arg0, %arg2 : i32, i32
  }
  func.func @transform_1(%arg0: i32, %arg1: i32, %arg2: i32) -> (i32, i32) {
    %c0_i32 = arith.constant 0 : i32
    return %arg2, %arg1 : i32, i32
  }
  func.func @transform_2(%arg0: i32, %arg1: i32, %arg2: i32) -> (i32, i32) {
    %c0_i32 = arith.constant 0 : i32
    %c0_i32_0 = arith.constant 0 : i32
    return %c0_i32, %arg1 : i32, i32
  }
  func.func @transform_3(%arg0: i32, %arg1: i32, %arg2: i32) -> (i32, i32) {
    %c0_i32 = arith.constant 0 : i32
    return %arg0, %arg1 : i32, i32
  }
}

</mosaic_0001>

<bundles_post_ra>
// kernel: bert_model_forward.14
= control target key start
LH: loop header
LB: loop body
LE: loop exit
PB: predicated region body
PF: predicated region fallthrough
CT: control target
= control target key end

     0   :  { %vm19_vm0 = vcmask 785408   ;;  %v151_v0 = vmov 0.0   ;;  %vm152_vm1 = vmmov 0   ;;  %vm47_vm2 = vcmask 261120   ;;  %s195_s1 = inlined_call_operand.vmem [shape: bf16[32,96], index: 1, kind: input, shape index: {}]   ;;  %s196_s0 = inlined_call_operand.vmem [shape: bf16[16,32], index: 0, kind: input, shape index: {}]   ;;  %s197_s2 = inlined_call_operand.vmem [shape: f32[1,96], index: 2, kind: input, shape index: {}]   ;;  %s198_s3 = inlined_call_operand.vmem [shape: bf16[16,96], index: 3, kind: output, shape index: {}]  }
   0x1   :  { %138 = vmatprep.subr.bf16.mxu0 %v151_v0  ;;  %v148_v1 = vld [vmem:[%s195_s1 + $0x8] sm:$0xff]   ;;  %142 = vmatprep.mubr.msk.bf16.mxu0 %vm152_vm1, %v151_v0  ;;  %20 = vst.msk [vmem:[#allocation2] sm:$0xff] %vm19_vm0, %v151_v0  ;;  %21 = vst.msk [vmem:[#allocation2 + $0x8] sm:$0xff] %vm19_vm0, %v151_v0  ;;  %v149_v2 = vld [vmem:[%s195_s1] sm:$0xff]   ;;  %vm119_vm3 = vcmask 781312  }
   0x2   :  { %139 = vmatpush3.bf16.msra.mxu0 %v148_v1  ;;  %v150_v3 = vld [vmem:[%s196_s0] sm:$0xff]  }
   0x3   :  { %140 = vmatprep.subr.bf16.mxu0 %v151_v0  ;;  %v130_v12 = vld [vmem:[%s197_s2] ss:$0 sm:$0xff] }
   0x6   :  { %141 = vmatpush3.bf16.msra.mxu0 %v149_v2 }
   0x8   :  { %v22_v4 = vld [vmem:[#allocation2] sm:$0xff]  ;;  %v23_v8 = vld [vmem:[#allocation2 + $0x8] sm:$0xff] }
   0x9   :  { %143 = vmatmul.mubr.msk.bf16.vlgmr.msra.gmra.mxu0 %vm47_vm2, %v150_v3 }
  0xc9   :  { %v85_v5 = vpop.f32.mrf.mxu0 }
  0xca   :  { %v92_v6 = vadd.f32 %v85_v5, %v22_v4 }
  0xcb   :  { %v144_v7 = vpop.f32.mrf.mxu0 }
  0xcc   :  { %95 = vst.msk [vmem:[#allocation2] sm:$0xff] %vm19_vm0, %v92_v6 }
  0xcd   :  { %v88_v9 = vpop.f32.mrf.mxu0 }
  0xce   :  { %v93_v10 = vadd.f32 %v88_v9, %v23_v8 }
  0xcf   :  { %v145_v11 = vpop.f32.mrf.mxu0 }
  0xd0   :  { %96 = vst.msk [vmem:[#allocation2 + $0x8] sm:$0xff] %vm19_vm0, %v93_v10 }
  0xd3   :  { %v100_v13 = vld [vmem:[#allocation2] sm:$0xff] }
  0xd4   :  { %v109_v14 = vadd.f32 %v130_v12, %v100_v13 }
  0xd6   :  { %v133_v15 = vpack.c.bf16 %v109_v14, %v109_v14 }
  0xd7   :  { %v101_v16 = vld [vmem:[#allocation2 + $0x8] sm:$0xff] }
  0xd8   :  { %120 = vst.msk [vmem:[%s198_s3] sm:$0xf] %vm119_vm3, %v133_v15  ;;  %v110_v17 = vadd.f32 %v130_v12, %v101_v16 }
  0xda   :  { %v134_v18 = vpack.c.bf16 %v110_v17, %v110_v17 }
  0xdc   :  { %121 = vst.msk [vmem:[%s198_s3 + $0x4] sm:$0xf] %vm119_vm3, %v134_v18 }

// kernel: bert_model_forward.17
= control target key start
LH: loop header
LB: loop body
LE: loop exit
PB: predicated region body
PF: predicated region fallthrough
CT: control target
= control target key end

     0   :  { %vm19_vm0 = vcmask 523264   ;;  %v153_v0 = vmov 0.0   ;;  %vm154_vm1 = vmmov 0   ;;  %vm47_vm2 = vcmask 261120   ;;  %s197_s1 = inlined_call_operand.vmem [shape: bf16[32,64], index: 1, kind: input, shape index: {}]   ;;  %s198_s0 = inlined_call_operand.vmem [shape: bf16[16,32], index: 0, kind: input, shape index: {}]   ;;  %s199_s2 = inlined_call_operand.vmem [shape: f32[1,64], index: 2, kind: input, shape index: {}]   ;;  %s200_s3 = inlined_call_operand.vmem [shape: bf16[16,64], index: 3, kind: output, shape index: {}]  }
   0x1   :  { %140 = vmatprep.subr.bf16.mxu0 %v153_v0  ;;  %v150_v1 = vld [vmem:[%s197_s1 + $0x8] sm:$0xff]   ;;  %144 = vmatprep.mubr.msk.bf16.mxu0 %vm154_vm1, %v153_v0  ;;  %20 = vst.msk [vmem:[#allocation2] sm:$0xff] %vm19_vm0, %v153_v0  ;;  %21 = vst.msk [vmem:[#allocation2 + $0x8] sm:$0xff] %vm19_vm0, %v153_v0  ;;  %v151_v2 = vld [vmem:[%s197_s1] sm:$0xff]   ;;  %vm121_vm3 = vcmask 519168  }
   0x2   :  { %141 = vmatpush3.bf16.msra.mxu0 %v150_v1  ;;  %v152_v3 = vld [vmem:[%s198_s0] sm:$0xff]  }
   0x3   :  { %142 = vmatprep.subr.bf16.mxu0 %v153_v0  ;;  %v132_v12 = vld [vmem:[%s199_s2] ss:$0 sm:$0xff] }
   0x6   :  { %143 = vmatpush3.bf16.msra.mxu0 %v151_v2 }
   0x8   :  { %v22_v4 = vld [vmem:[#allocation2] sm:$0xff]  ;;  %v23_v8 = vld [vmem:[#allocation2 + $0x8] sm:$0xff] }
   0x9   :  { %145 = vmatmul.mubr.msk.bf16.vlgmr.msra.gmra.mxu0 %vm47_vm2, %v152_v3 }
  0xc9   :  { %v85_v5 = vpop.f32.mrf.mxu0 }
  0xca   :  { %v92_v6 = vadd.f32 %v85_v5, %v22_v4 }
  0xcb   :  { %v146_v7 = vpop.f32.mrf.mxu0 }
  0xcc   :  { %95 = vst.msk [vmem:[#allocation2] sm:$0xff] %vm19_vm0, %v92_v6 }
  0xcd   :  { %v88_v9 = vpop.f32.mrf.mxu0 }
  0xce   :  { %v93_v10 = vadd.f32 %v88_v9, %v23_v8 }
  0xcf   :  { %v147_v11 = vpop.f32.mrf.mxu0 }
  0xd0   :  { %96 = vst.msk [vmem:[#allocation2 + $0x8] sm:$0xff] %vm19_vm0, %v93_v10 }
  0xd3   :  { %v100_v13 = vld [vmem:[#allocation2] sm:$0xff] }
  0xd4   :  { %v109_v14 = vadd.f32 %v132_v12, %v100_v13 }
  0xd6   :  { %v111_v15 = vmax.f32 %v109_v14, 0.0 }
  0xd7   :  { %v101_v16 = vld [vmem:[#allocation2 + $0x8] sm:$0xff] }
  0xd8   :  { %v135_v17 = vpack.c.bf16 %v111_v15, %v111_v15  ;;  %v110_v18 = vadd.f32 %v132_v12, %v101_v16 }
  0xda   :  { %122 = vst.msk [vmem:[%s200_s3] sm:$0xf] %vm121_vm3, %v135_v17  ;;  %v112_v19 = vmax.f32 %v110_v18, 0.0 }
  0xdc   :  { %v136_v20 = vpack.c.bf16 %v112_v19, %v112_v19 }
  0xde   :  { %123 = vst.msk [vmem:[%s200_s3 + $0x4] sm:$0xf] %vm121_vm3, %v136_v20 }

// kernel: bert_model_forward.16
= control target key start
LH: loop header
LB: loop body
LE: loop exit
PB: predicated region body
PF: predicated region fallthrough
CT: control target
= control target key end

     0   :  { %vm28_vm0 = vcmask 261120   ;;  %v220_v0 = vmov 0.0   ;;  %vm221_vm1 = vmmov 0   ;;  %vm178_vm2 = vcmask 257024   ;;  %s293_s1 = inlined_call_operand.vmem [shape: bf16[32,32], index: 1, kind: input, shape index: {}]   ;;  %s294_s0 = inlined_call_operand.vmem [shape: bf16[16,32], index: 0, kind: input, shape index: {}]   ;;  %s295_s3 = inlined_call_operand.vmem [shape: bf16[16,32], index: 3, kind: input, shape index: {}]   ;;  %s296_s2 = inlined_call_operand.vmem [shape: f32[1,32], index: 2, kind: input, shape index: {}]   ;;  %s297_s4 = inlined_call_operand.vmem [shape: f32[1,32], index: 4, kind: input, shape index: {}]   ;;  %s298_s5 = inlined_call_operand.vmem [shape: f32[1,32], index: 5, kind: input, shape index: {}]   ;;  %s299_s6 = inlined_call_operand.vmem [shape: bf16[16,32], index: 6, kind: output, shape index: {}]  }
   0x1   :  { %203 = vmatprep.subr.bf16.mxu0 %v220_v0  ;;  %v213_v1 = vld [vmem:[%s293_s1 + $0x8] sm:$0xff]   ;;  %207 = vmatprep.mubr.msk.bf16.mxu0 %vm221_vm1, %v220_v0  ;;  %29 = vst.msk [vmem:[#allocation2] sm:$0xff] %vm28_vm0, %v220_v0  ;;  %30 = vst.msk [vmem:[#allocation2 + $0x8] sm:$0xff] %vm28_vm0, %v220_v0  ;;  %v214_v2 = vld [vmem:[%s293_s1] sm:$0xff]  }
   0x2   :  { %204 = vmatpush3.bf16.msra.mxu0 %v213_v1  ;;  %v215_v3 = vld [vmem:[%s294_s0] sm:$0xff]  }
   0x3   :  { %205 = vmatprep.subr.bf16.mxu0 %v220_v0  ;;  %v197_v12 = vld [vmem:[%s295_s3] sm:$0xff]  }
   0x4   :  { %v189_v13 = vld [vmem:[%s296_s2] ss:$0 sm:$0xff]  ;;  %v198_v14 = vunpack.c.l.bf16 %v197_v12  ;;  %v199_v18 = vunpack.c.h.bf16 %v197_v12 }
   0x5   :  { %v190_v41 = vld [vmem:[%s297_s4] ss:$0 sm:$0xff] }
   0x6   :  { %206 = vmatpush3.bf16.msra.mxu0 %v214_v2  ;;  %v191_v43 = vld [vmem:[%s298_s5] ss:$0 sm:$0xff] }
   0x8   :  { %v31_v4 = vld [vmem:[#allocation2] sm:$0xff]  ;;  %v32_v8 = vld [vmem:[#allocation2 + $0x8] sm:$0xff] }
   0x9   :  { %208 = vmatmul.mubr.msk.bf16.vlgmr.msra.gmra.mxu0 %vm28_vm0, %v215_v3 }
  0xc9   :  { %v94_v5 = vpop.f32.mrf.mxu0 }
  0xca   :  { %v101_v6 = vadd.f32 %v94_v5, %v31_v4 }
  0xcb   :  { %v209_v7 = vpop.f32.mrf.mxu0 }
  0xcc   :  { %103 = vst.msk [vmem:[#allocation2] sm:$0xff] %vm28_vm0, %v101_v6 }
  0xcd   :  { %v97_v9 = vpop.f32.mrf.mxu0 }
  0xce   :  { %v102_v10 = vadd.f32 %v97_v9, %v32_v8 }
  0xcf   :  { %v210_v11 = vpop.f32.mrf.mxu0 }
  0xd0   :  { %104 = vst.msk [vmem:[#allocation2 + $0x8] sm:$0xff] %vm28_vm0, %v102_v10 }
  0xd3   :  { %v108_v15 = vld [vmem:[#allocation2] sm:$0xff] }
  0xd4   :  { %v117_v16 = vadd.f32 %v189_v13, %v108_v15 }
  0xd6   :  { %v123_v17 = vadd.f32 %v198_v14, %v117_v16 }
  0xd7   :  { %v109_v19 = vld [vmem:[#allocation2 + $0x8] sm:$0xff] }
  0xd8   :  { %v125_v20 = vsel %vm28_vm0, %v123_v17, 0.0  ;;  %v118_v21 = vadd.f32 %v189_v13, %v109_v19 }
  0xd9   :  { %126 = vadd.xlane.f32.xlu0 %v125_v20 }
  0xda   :  { %v124_v22 = vadd.f32 %v199_v18, %v118_v21 }
  0xdc   :  { %v128_v23 = vsel %vm28_vm0, %v124_v22, 0.0 }
  0xdd   :  { %129 = vadd.xlane.f32.xlu0 %v128_v23 }
 0x162   :  { %v127_v24 = vpop.xlane.xlu0 %126 }
 0x163   :  { %v132_v25 = vmul.f32 0.03125, %v127_v24 }
 0x165   :  { %v134_v26 = vsub.f32 %v123_v17, %v132_v25 }
 0x166   :  { %v130_v27 = vpop.xlane.xlu0 %129 }
 0x167   :  { %v133_v28 = vmul.f32 0.03125, %v130_v27  ;;  %v136_v29 = vmul.f32 %v134_v26, %v134_v26 }
 0x169   :  { %v135_v30 = vsub.f32 %v124_v22, %v133_v28  ;;  %v138_v31 = vsel %vm28_vm0, %v136_v29, 0.0 }
 0x16a   :  { %139 = vadd.xlane.f32.xlu1 %v138_v31 }
 0x16b   :  { %v137_v32 = vmul.f32 %v135_v30, %v135_v30 }
 0x16d   :  { %v141_v33 = vsel %vm28_vm0, %v137_v32, 0.0 }
 0x16e   :  { %142 = vadd.xlane.f32.xlu1 %v141_v33 }
 0x1f3   :  { %v140_v34 = vpop.xlane.xlu1 %139 }
 0x1f4   :  { %v144_v35 = vmul.f32 0.03125, %v140_v34 }
 0x1f6   :  { %v146_v36 = vadd.f32 1e-05, %v144_v35 }
 0x1f7   :  { %v143_v37 = vpop.xlane.xlu1 %142 }
 0x1f8   :  { %216 = vrsqrt.f32 %v146_v36  ;;  %v145_v38 = vmul.f32 0.03125, %v143_v37 }
 0x1fa   :  { %v147_v39 = vadd.f32 1e-05, %v145_v38 }
 0x1fc   :  { %218 = vrsqrt.f32 %v147_v39 }
 0x205   :  { %v217_v40 = vpop.eup %216 }
 0x206   :  { %v150_v42 = vmul.f32 %v217_v40, %v134_v26 }
 0x208   :  { %v159_v44 = vmul.f32 %v190_v41, %v150_v42 }
 0x209   :  { %v219_v45 = vpop.eup %218 }
 0x20a   :  { %v168_v46 = vadd.f32 %v191_v43, %v159_v44  ;;  %v151_v47 = vmul.f32 %v219_v45, %v135_v30 }
 0x20c   :  { %v194_v48 = vpack.c.bf16 %v168_v46, %v168_v46  ;;  %v160_v49 = vmul.f32 %v190_v41, %v151_v47 }
 0x20e   :  { %179 = vst.msk [vmem:[%s299_s6] sm:$0xf] %vm178_vm2, %v194_v48  ;;  %v169_v50 = vadd.f32 %v191_v43, %v160_v49 }
 0x210   :  { %v195_v51 = vpack.c.bf16 %v169_v50, %v169_v50 }
 0x212   :  { %180 = vst.msk [vmem:[%s299_s6 + $0x4] sm:$0xf] %vm178_vm2, %v195_v51 }

// kernel: bert_model_forward.15
= control target key start
LH: loop header
LB: loop body
LE: loop exit
PB: predicated region body
PF: predicated region fallthrough
CT: control target
= control target key end

     0   :  { %s601_s0 = inlined_call_operand.vmem [shape: s32[2], index: 0, kind: input, shape index: {}]   ;;  %s602_s1 = inlined_call_operand.vmem [shape: bf16[2,8,96], index: 1, kind: input, shape index: {}]   ;;  %s603_s2 = inlined_call_operand.vmem [shape: bf16[2,8,32], index: 2, kind: output, shape index: {}]  }
   0x1   :  { %s7_s11 = sshll.u32 %s601_s0, 4  ;;  %s8_s11 = int_to_ptr.vmem [resolvable:$true] %s7_s11 }
   0x2   :  { %s493_s12 = scalar_lea.vmem %s8_s11, 16  ;;  %p498_p1 = scmp.lt.s32.totalorder %s8_s11, %s8_s11 }
   0x3   :  { %p494_p0 = scmp.ne.s32.totalorder %s8_s11, %s493_s12  ;;  %p499_p2 = scmp.lt.s32.totalorder %s493_s12, %s493_s12 }
   0x5   :  { %p500_p3 = por %p499_p2, %p498_p1 }
   0x7   :  { %p501_p4 = pnand %p500_p3, %p494_p0 }
   0x9   :  { %504 = shalt.err (!%p501_p4)  }
   0xa   :  { %s515_s13 = smov [#allocation3]  }
   0xb   :  { %10 = dma.vmem_to_smem %s8_s11, 16, %s515_s13, [#allocation2] }
   0xc   :  { %509 = dma.done.wait [#allocation2], 16 }
   0xd   :  { %510 = vsyncadd [#allocation2], 4294967280 }
   0xe   :  { %12 = sfence }
   0xf   :  { %s542_s14 = smov 0  }
  0x10 LB: > { %s419_s0 = sadd.s32 4294967295, %s513_s14   ;;  %p423_p5 = scmp.ge.s32.totalorder %s513_s14, 1  ;;  %s513_s14 = sphi %s542_s14, %s18_s14  }
  0x11   : > { %p93_p6 = scmp.lt.s32.totalorder %s513_s14, 3 }
  0x13   : > { %p94_p7 = pnand %p423_p5, %p93_p6 }
  0x14   : > { %p111_p8 = scmp.lt.s32.totalorder (!%p94_p7), %s419_s0, 1  ;;  %s518_s20 = smov (!%p94_p7), 96  }
  0x15   : > { %97 = sbr.rel (%p94_p7) target bundleno = 1495 (0x5d7), region = 24  ;;  %s519_s21 = smov (!%p94_p7), 64  }
  0x16   : > { %s120_s22 = sld [smem:[#allocation3 + %s419_s0]] (!%p94_p7)  ;;  %s520_s23 = smov (!%p94_p7), 80  }
  0x17   : > { %s521_s24 = smov (!%p94_p7), 112   ;;  %s522_s28 = smov (!%p94_p7), 48  }
  0x18   : > { %s523_s29 = smov (!%p94_p7), 16  }
  0x1a   : > { %v516_v0 = vmov 0.0   ;;  %vm517_vm0 = vmmov 0   ;;  %s551_s15 = scalar_select %p111_p8, %s419_s0, 1  ;;  %vm131_vm1 = vcmask 130048   ;;  %v122_v5 = vlaneseq }
  0x1b   : > { %443 = vmatprep.subr.bf16.mxu0 %v516_v0  ;;  %445 = vmatprep.mubr.msk.bf16.mxu0 %vm517_vm0, %v516_v0  ;;  %vm180_vm3 = vcmask 64512   ;;  %vm198_vm4 = vcmask 1043456   ;;  %vm243_vm5 = vcmask 125952   ;;  %vm364_vm6 = vcmask 257152  }
  0x1c   : > { %449 = vmatprep.subr.bf16.mxu1 %v516_v0  ;;  %451 = vmatprep.mubr.msk.bf16.mxu1 %vm517_vm0, %v516_v0  ;;  %s424_s16 = sshll.u32 %s551_s15, 2  ;;  %v123_v6 = vand.u32 127, %v122_v5  ;;  %v124_v7 = vstv %s120_s22 }
  0x1d   : > { %s114_s19 = scalar_lea.vmem %s602_s1, %s424_s16  ;;  %s587_s27 = scalar_lea.vmem %s603_s2, %s424_s16 }
  0x1e   : > { %v121_v1 = vld [vmem:[%s114_s19] sm:$0xf]  ;;  %vm567_vm2 = vcmp.lt.s32.totalorder %v123_v6, %v124_v7 }
  0x1f   : > { %v560_v2 = vcombine.low %v121_v1, %v121_v1 }
  0x21   : > { %129 = vrot.lane.b32.xlu0 %v560_v2, %s518_s20  ;;  %193 = vrot.lane.b32.xlu1 %v560_v2, %s519_s21 }
  0x93   : > { %v130_v3 = vpop.permute.xlu0 %129  ;;  %v194_v16 = vpop.permute.xlu1 %193 }
  0x94   : > { %v136_v4 = vsel %vm131_vm1, %v130_v3, 0  ;;  %v200_v17 = vsel %vm198_vm4, %v194_v16, 0 }
  0x95   : > { %444 = vmatpush3.bf16.xpose.msra.mxu0 %v136_v4  ;;  %450 = vmatpush3.bf16.msra.mxu1 %v200_v17 }
  0x96   : > { %461 = vmatprep.subr.bf16.mxu0 %v516_v0  ;;  %455 = vmatprep.subr.bf16.mxu1 %v516_v0 }
  0x9c   : > { %446 = vmatmul.mubr.msk.bf16.vlgmr.msra.gmra.mxu0 %vm131_vm1, %v121_v1 }
  0x9d   : > { %463 = vmatprep.mubr.msk.bf16.mxu0 %vm517_vm0, %v516_v0 }
 0x15c   : > { %v172_v8 = vpop.f32.mrf.mxu0 }
 0x15d   : > { %v178_v10 = vmul.f32 0.25, %v172_v8 }
 0x15e   : > { %v447_v11 = vpop.f32.mrf.mxu0 }
 0x15f   : > { %v179_v12 = vsel %vm567_vm2, %v178_v10, -1000000.0 }
 0x160   : > { %v175_v13 = vpop.f32.mrf.mxu0  ;;  %v181_v14 = vsel %vm180_vm3, %v179_v12, -inf }
 0x161   : > { %182 = vmax.xlane.f32.xlu0 %v181_v14 }
 0x162   : > { %v448_v15 = vpop.f32.mrf.mxu0 }
 0x1ea   : > { %v183_v18 = vpop.xlane.xlu0 %182 }
 0x1eb   : > { %v184_v19 = vsub.f32 %v179_v12, %v183_v18 }
 0x1ed   : > { %v185_v20 = vmul.f32 1.442695, %v184_v19 }
 0x1ef   : > { %485 = vpow2.f32 %v185_v20 }
 0x1fc   : > { %v486_v21 = vpop.eup %485 }
 0x1fd   : > { %v187_v22 = vsel %vm180_vm3, %v486_v21, 0.0 }
 0x1fe   : > { %188 = vadd.xlane.f32.xlu1 %v187_v22 }
 0x20f   : > { %247 = vrot.lane.b32.xlu1 %v560_v2, %s520_s23 }
 0x213   : > { %245 = vrot.lane.b32.xlu1 %v560_v2, %s521_s24 }
 0x287   : > { %v189_v23 = vpop.xlane.xlu1 %188 }
 0x288   : > { %487 = vrcp.f32 %v189_v23 }
 0x28b   : > { %v248_v25 = vpop.permute.xlu1 %247 }
 0x28c   : > { %v253_v27 = vsel %vm131_vm1, %v248_v25, 0 }
 0x28f   : > { %v246_v29 = vpop.permute.xlu1 %245 }
 0x295   : > { %v488_v24 = vpop.eup %487 }
 0x296   : > { %v191_v26 = vmul.f32 %v488_v24, %v486_v21 }
 0x298   : > { %v192_v28 = vpack.c.bf16 %v191_v26, %v191_v26 }
 0x29a   : > { %452 = vmatmul.mubr.msk.bf16.vlgmr.msra.gmra.mxu1 %vm180_vm3, %v192_v28 }
 0x29b   : > { %456 = vmatpush3.bf16.xpose.msra.mxu1 %v253_v27  ;;  %457 = vmatprep.mubr.msk.bf16.mxu1 %vm517_vm0, %v516_v0 }
 0x2a2   : > { %458 = vmatmul.mubr.msk.bf16.vlgmr.msra.gmra.mxu1 %vm131_vm1, %v246_v29 }
 0x35a   : > { %v236_v30 = vpop.f32.mrf.mxu1 }
 0x35b   : > { %v242_v31 = vpack.c.bf16 %v236_v30, %v236_v30 }
 0x35c   : > { %v453_v32 = vpop.f32.mrf.mxu1 }
 0x35d   : > { %244 = vst.msk [vmem:[%s587_s27] sm:$0xf] %vm243_vm5, %v242_v31 }
 0x35e   : > { %v239_v33 = vpop.f32.mrf.mxu1 }
 0x360   : > { %v454_v34 = vpop.f32.mrf.mxu1 }
 0x362   : > { %v289_v35 = vpop.f32.mrf.mxu1 }
 0x363   : > { %v295_v36 = vmul.f32 0.25, %v289_v35 }
 0x364   : > { %v459_v37 = vpop.f32.mrf.mxu1 }
 0x365   : > { %v296_v38 = vsel %vm567_vm2, %v295_v36, -1000000.0 }
 0x366   : > { %v292_v39 = vpop.f32.mrf.mxu1  ;;  %v297_v40 = vsel %vm180_vm3, %v296_v38, -inf }
 0x367   : > { %298 = vmax.xlane.f32.xlu1 %v297_v40 }
 0x368   : > { %v460_v41 = vpop.f32.mrf.mxu1 }
 0x3f0   : > { %v299_v42 = vpop.xlane.xlu1 %298 }
 0x3f1   : > { %v300_v43 = vsub.f32 %v296_v38, %v299_v42 }
 0x3f3   : > { %v301_v44 = vmul.f32 1.442695, %v300_v43 }
 0x3f5   : > { %489 = vpow2.f32 %v301_v44 }
 0x402   : > { %v490_v45 = vpop.eup %489 }
 0x403   : > { %v303_v46 = vsel %vm180_vm3, %v490_v45, 0.0 }
 0x404   : > { %304 = vadd.xlane.f32.xlu0 %v303_v46 }
 0x41a   : > { %309 = vrot.lane.b32.xlu0 %v560_v2, %s522_s28 }
 0x48d   : > { %v305_v47 = vpop.xlane.xlu0 %304 }
 0x48e   : > { %491 = vrcp.f32 %v305_v47 }
 0x491   : > { %v310_v48 = vpop.permute.xlu0 %309 }
 0x492   : > { %v315_v49 = vsel %vm198_vm4, %v310_v48, 0 }
 0x493   : > { %462 = vmatpush3.bf16.msra.mxu0 %v315_v49 }
 0x49b   : > { %v492_v50 = vpop.eup %491 }
 0x49c   : > { %v307_v51 = vmul.f32 %v492_v50, %v490_v45 }
 0x49e   : > { %v308_v52 = vpack.c.bf16 %v307_v51, %v307_v51 }
 0x4a0   : > { %464 = vmatmul.mubr.msk.bf16.vlgmr.msra.gmra.mxu0 %vm180_vm3, %v308_v52 }
 0x560   : > { %v351_v53 = vpop.f32.mrf.mxu0 }
 0x561   : > { %v434_v54 = vpack.c.bf16 %v351_v53, %v351_v53 }
 0x562   : > { %v465_v55 = vpop.f32.mrf.mxu0 }
 0x563   : > { %361 = vrot.lane.b32.xlu0 %v434_v54, %s523_s29 }
 0x564   : > { %v354_v56 = vpop.f32.mrf.mxu0 }
 0x566   : > { %v466_v57 = vpop.f32.mrf.mxu0 }
 0x5d5   : > { %v362_v58 = vpop.permute.xlu0 %361 }
 0x5d6   : > { %365 = vst.msk [vmem:[%s587_s27] sm:$0xf] %vm364_vm6, %v362_v58 }
 0x5d7 PF: > { %s18_s14 = sadd.s32 1, %s513_s14  }
 0x5d8   : > { %p15_p9 = scmp.ge.s32.totalorder %s18_s14, 4  }
 0x5da   :  { %17 = sbr.rel (!%p15_p9) target bundleno = 16 (0x10), region = 54 }

// kernel: bert_model_forward.18
= control target key start
LH: loop header
LB: loop body
LE: loop exit
PB: predicated region body
PF: predicated region fallthrough
CT: control target
= control target key end

     0   :  { %vm28_vm0 = vcmask 261120   ;;  %v247_v0 = vmov 0.0   ;;  %vm248_vm1 = vmmov 0   ;;  %vm72_vm2 = vcmask 523264   ;;  %s325_s1 = inlined_call_operand.vmem [shape: bf16[64,32], index: 1, kind: input, shape index: {}]   ;;  %s326_s0 = inlined_call_operand.vmem [shape: bf16[16,64], index: 0, kind: input, shape index: {}]   ;;  %s327_s3 = inlined_call_operand.vmem [shape: bf16[16,32], index: 3, kind: input, shape index: {}]   ;;  %s328_s2 = inlined_call_operand.vmem [shape: f32[1,32], index: 2, kind: input, shape index: {}]   ;;  %s329_s4 = inlined_call_operand.vmem [shape: f32[1,32], index: 4, kind: input, shape index: {}]   ;;  %s330_s5 = inlined_call_operand.vmem [shape: f32[1,32], index: 5, kind: input, shape index: {}]   ;;  %s331_s6 = inlined_call_operand.vmem [shape: bf16[16,32], index: 6, kind: output, shape index: {}]  }
   0x1   :  { %224 = vmatprep.subr.bf16.mxu0 %v247_v0  ;;  %v238_v1 = vld [vmem:[%s325_s1 + $0x18] sm:$0xff]   ;;  %232 = vmatprep.mubr.msk.bf16.mxu0 %vm248_vm1, %v247_v0  ;;  %29 = vst.msk [vmem:[#allocation2] sm:$0xff] %vm28_vm0, %v247_v0  ;;  %30 = vst.msk [vmem:[#allocation2 + $0x8] sm:$0xff] %vm28_vm0, %v247_v0  ;;  %v239_v2 = vld [vmem:[%s325_s1 + $0x10] sm:$0xff]   ;;  %vm195_vm3 = vcmask 257024  }
   0x2   :  { %225 = vmatpush3.bf16.msra.mxu0 %v238_v1  ;;  %v240_v3 = vld [vmem:[%s325_s1 + $0x8] sm:$0xff]   ;;  %v241_v4 = vld [vmem:[%s325_s1] sm:$0xff]  }
   0x3   :  { %226 = vmatprep.subr.bf16.mxu0 %v247_v0  ;;  %v242_v5 = vld [vmem:[%s326_s0] sm:$0xff]  }
   0x4   :  { %v216_v14 = vld [vmem:[%s327_s3] sm:$0xff]  }
   0x5   :  { %v208_v15 = vld [vmem:[%s328_s2] ss:$0 sm:$0xff]  ;;  %v217_v16 = vunpack.c.l.bf16 %v216_v14  ;;  %v218_v20 = vunpack.c.h.bf16 %v216_v14 }
   0x6   :  { %227 = vmatpush3.bf16.msra.mxu0 %v239_v2  ;;  %v209_v43 = vld [vmem:[%s329_s4] ss:$0 sm:$0xff] }
   0x7   :  { %228 = vmatprep.subr.bf16.mxu0 %v247_v0  ;;  %v210_v45 = vld [vmem:[%s330_s5] ss:$0 sm:$0xff] }
   0x8   :  { %v31_v6 = vld [vmem:[#allocation2] sm:$0xff]  ;;  %v32_v10 = vld [vmem:[#allocation2 + $0x8] sm:$0xff] }
   0xa   :  { %229 = vmatpush3.bf16.msra.mxu0 %v240_v3 }
   0xb   :  { %230 = vmatprep.subr.bf16.mxu0 %v247_v0 }
   0xe   :  { %231 = vmatpush3.bf16.msra.mxu0 %v241_v4 }
  0x11   :  { %233 = vmatmul.mubr.msk.bf16.vlgmr.msra.gmra.mxu0 %vm72_vm2, %v242_v5 }
  0xd1   :  { %v110_v7 = vpop.f32.mrf.mxu0 }
  0xd2   :  { %v117_v8 = vadd.f32 %v110_v7, %v31_v6 }
  0xd3   :  { %v234_v9 = vpop.f32.mrf.mxu0 }
  0xd4   :  { %120 = vst.msk [vmem:[#allocation2] sm:$0xff] %vm28_vm0, %v117_v8 }
  0xd5   :  { %v113_v11 = vpop.f32.mrf.mxu0 }
  0xd6   :  { %v118_v12 = vadd.f32 %v113_v11, %v32_v10 }
  0xd7   :  { %v235_v13 = vpop.f32.mrf.mxu0 }
  0xd8   :  { %121 = vst.msk [vmem:[#allocation2 + $0x8] sm:$0xff] %vm28_vm0, %v118_v12 }
  0xdb   :  { %v125_v17 = vld [vmem:[#allocation2] sm:$0xff] }
  0xdc   :  { %v134_v18 = vadd.f32 %v208_v15, %v125_v17 }
  0xde   :  { %v140_v19 = vadd.f32 %v217_v16, %v134_v18 }
  0xdf   :  { %v126_v21 = vld [vmem:[#allocation2 + $0x8] sm:$0xff] }
  0xe0   :  { %v142_v22 = vsel %vm28_vm0, %v140_v19, 0.0  ;;  %v135_v23 = vadd.f32 %v208_v15, %v126_v21 }
  0xe1   :  { %143 = vadd.xlane.f32.xlu0 %v142_v22 }
  0xe2   :  { %v141_v24 = vadd.f32 %v218_v20, %v135_v23 }
  0xe4   :  { %v145_v25 = vsel %vm28_vm0, %v141_v24, 0.0 }
  0xe5   :  { %146 = vadd.xlane.f32.xlu0 %v145_v25 }
 0x16a   :  { %v144_v26 = vpop.xlane.xlu0 %143 }
 0x16b   :  { %v149_v27 = vmul.f32 0.03125, %v144_v26 }
 0x16d   :  { %v151_v28 = vsub.f32 %v140_v19, %v149_v27 }
 0x16e   :  { %v147_v29 = vpop.xlane.xlu0 %146 }
 0x16f   :  { %v150_v30 = vmul.f32 0.03125, %v147_v29  ;;  %v153_v31 = vmul.f32 %v151_v28, %v151_v28 }
 0x171   :  { %v152_v32 = vsub.f32 %v141_v24, %v150_v30  ;;  %v155_v33 = vsel %vm28_vm0, %v153_v31, 0.0 }
 0x172   :  { %156 = vadd.xlane.f32.xlu1 %v155_v33 }
 0x173   :  { %v154_v34 = vmul.f32 %v152_v32, %v152_v32 }
 0x175   :  { %v158_v35 = vsel %vm28_vm0, %v154_v34, 0.0 }
 0x176   :  { %159 = vadd.xlane.f32.xlu1 %v158_v35 }
 0x1fb   :  { %v157_v36 = vpop.xlane.xlu1 %156 }
 0x1fc   :  { %v161_v37 = vmul.f32 0.03125, %v157_v36 }
 0x1fe   :  { %v163_v38 = vadd.f32 1e-05, %v161_v37 }
 0x1ff   :  { %v160_v39 = vpop.xlane.xlu1 %159 }
 0x200   :  { %243 = vrsqrt.f32 %v163_v38  ;;  %v162_v40 = vmul.f32 0.03125, %v160_v39 }
 0x202   :  { %v164_v41 = vadd.f32 1e-05, %v162_v40 }
 0x204   :  { %245 = vrsqrt.f32 %v164_v41 }
 0x20d   :  { %v244_v42 = vpop.eup %243 }
 0x20e   :  { %v167_v44 = vmul.f32 %v244_v42, %v151_v28 }
 0x210   :  { %v176_v46 = vmul.f32 %v209_v43, %v167_v44 }
 0x211   :  { %v246_v47 = vpop.eup %245 }
 0x212   :  { %v185_v48 = vadd.f32 %v210_v45, %v176_v46  ;;  %v168_v49 = vmul.f32 %v246_v47, %v152_v32 }
 0x214   :  { %v213_v50 = vpack.c.bf16 %v185_v48, %v185_v48  ;;  %v177_v51 = vmul.f32 %v209_v43, %v168_v49 }
 0x216   :  { %196 = vst.msk [vmem:[%s331_s6] sm:$0xf] %vm195_vm3, %v213_v50  ;;  %v186_v52 = vadd.f32 %v210_v45, %v177_v51 }
 0x218   :  { %v214_v53 = vpack.c.bf16 %v186_v52, %v186_v52 }
 0x21a   :  { %197 = vst.msk [vmem:[%s331_s6 + $0x4] sm:$0xf] %vm195_vm3, %v214_v53 }

// kernel: bert_model_forward.25
= control target key start
LH: loop header
LB: loop body
LE: loop exit
PB: predicated region body
PF: predicated region fallthrough
CT: control target
= control target key end

     0   :  { %vm19_vm0 = vcmask 521216   ;;  %v122_v0 = vmov 0.0   ;;  %vm123_vm1 = vmmov 0   ;;  %vm39_vm2 = vcmask 261120   ;;  %s162_s1 = inlined_call_operand.vmem [shape: bf16[32,64], index: 1, kind: input, shape index: {}]   ;;  %s163_s0 = inlined_call_operand.vmem [shape: bf16[6,32], index: 0, kind: input, shape index: {}]   ;;  %s164_s2 = inlined_call_operand.vmem [shape: f32[1,64], index: 2, kind: input, shape index: {}]   ;;  %s165_s3 = inlined_call_operand.vmem [shape: f32[6,64], index: 3, kind: output, shape index: {}]  }
   0x1   :  { %20 = vst.msk [vmem:[#allocation2] sm:$0x3f] %vm19_vm0, %v122_v0  ;;  %110 = vmatprep.subr.bf16.mxu0 %v122_v0  ;;  %v120_v1 = vld [vmem:[%s162_s1 + $0x8] sm:$0xff]   ;;  %114 = vmatprep.mubr.msk.bf16.mxu0 %vm123_vm1, %v122_v0  ;;  %v121_v2 = vld [vmem:[%s162_s1] sm:$0xff]  }
   0x2   :  { %111 = vmatpush3.bf16.msra.mxu0 %v120_v1  ;;  %v22_v3 = vld [vmem:[%s163_s0] sm:$0x7] }
   0x3   :  { %112 = vmatprep.subr.bf16.mxu0 %v122_v0  ;;  %v106_v10 = vld [vmem:[%s164_s2] ss:$0 sm:$0xff] }
   0x6   :  { %113 = vmatpush3.bf16.msra.mxu0 %v121_v2 }
   0x8   :  { %v21_v4 = vld [vmem:[#allocation2] sm:$0x3f] }
   0x9   :  { %115 = vmatmul.mubr.msk.bf16.vlgmr.msra.gmra.mxu0 %vm39_vm2, %v22_v3 }
  0xc9   :  { %v77_v5 = vpop.f32.mrf.mxu0 }
  0xca   :  { %v83_v6 = vadd.f32 %v77_v5, %v21_v4 }
  0xcb   :  { %v116_v7 = vpop.f32.mrf.mxu0 }
  0xcc   :  { %85 = vst.msk [vmem:[#allocation2] sm:$0x3f] %vm19_vm0, %v83_v6 }
  0xcd   :  { %v80_v8 = vpop.f32.mrf.mxu0 }
  0xcf   :  { %v117_v9 = vpop.f32.mrf.mxu0 }
  0xd3   :  { %v89_v11 = vld [vmem:[#allocation2] sm:$0x3f] }
  0xd4   :  { %v97_v12 = vadd.f32 %v106_v10, %v89_v11 }
  0xd6   :  { %98 = vst.msk [vmem:[%s165_s3] sm:$0x3f] %vm19_vm0, %v97_v12 }

// kernel: bert_model_forward.26
= control target key start
LH: loop header
LB: loop body
LE: loop exit
PB: predicated region body
PF: predicated region fallthrough
CT: control target
= control target key end

     0   :  { %vm19_vm0 = vcmask 254976   ;;  %v127_v0 = vmov 0.0   ;;  %vm128_vm1 = vmmov 0   ;;  %vm39_vm2 = vcmask 261120   ;;  %s166_s1 = inlined_call_operand.vmem [shape: bf16[32,32], index: 1, kind: input, shape index: {}]   ;;  %s167_s0 = inlined_call_operand.vmem [shape: bf16[2,32], index: 0, kind: input, shape index: {}]   ;;  %s168_s2 = inlined_call_operand.vmem [shape: f32[1,32], index: 2, kind: input, shape index: {}]   ;;  %s169_s3 = inlined_call_operand.vmem [shape: bf16[2,32], index: 3, kind: output, shape index: {}]  }
   0x1   :  { %20 = vst.msk [vmem:[#allocation2] sm:$0x3] %vm19_vm0, %v127_v0  ;;  %113 = vmatprep.subr.bf16.mxu0 %v127_v0  ;;  %v123_v1 = vld [vmem:[%s166_s1 + $0x8] sm:$0xff]   ;;  %117 = vmatprep.mubr.msk.bf16.mxu0 %vm128_vm1, %v127_v0  ;;  %v124_v2 = vld [vmem:[%s166_s1] sm:$0xff]   ;;  %vm100_vm3 = vcmask 253952  }
   0x2   :  { %114 = vmatpush3.bf16.msra.mxu0 %v123_v1  ;;  %v22_v3 = vld [vmem:[%s167_s0] sm:$0x1] }
   0x3   :  { %115 = vmatprep.subr.bf16.mxu0 %v127_v0  ;;  %v109_v10 = vld [vmem:[%s168_s2] ss:$0 sm:$0xff] }
   0x6   :  { %116 = vmatpush3.bf16.msra.mxu0 %v124_v2 }
   0x8   :  { %v21_v4 = vld [vmem:[#allocation2] sm:$0x3] }
   0x9   :  { %118 = vmatmul.mubr.msk.bf16.vlgmr.msra.gmra.mxu0 %vm39_vm2, %v22_v3 }
  0xc9   :  { %v77_v5 = vpop.f32.mrf.mxu0 }
  0xca   :  { %v83_v6 = vadd.f32 %v77_v5, %v21_v4 }
  0xcb   :  { %v119_v7 = vpop.f32.mrf.mxu0 }
  0xcc   :  { %85 = vst.msk [vmem:[#allocation2] sm:$0x3] %vm19_vm0, %v83_v6 }
  0xcd   :  { %v80_v8 = vpop.f32.mrf.mxu0 }
  0xcf   :  { %v120_v9 = vpop.f32.mrf.mxu0 }
  0xd3   :  { %v89_v11 = vld [vmem:[#allocation2] sm:$0x3] }
  0xd4   :  { %v97_v12 = vadd.f32 %v109_v10, %v89_v11 }
  0xd6   :  { %125 = vtanh.f32 %v97_v12 }
  0xe3   :  { %v126_v13 = vpop.eup %125 }
  0xe4   :  { %v99_v14 = vpack.c.bf16 %v126_v13, %v126_v13 }
  0xe6   :  { %101 = vst.msk [vmem:[%s169_s3] sm:$0x1] %vm100_vm3, %v99_v14 }

// kernel: bert_model_forward.24
= control target key start
LH: loop header
LB: loop body
LE: loop exit
PB: predicated region body
PF: predicated region fallthrough
CT: control target
= control target key end

     0   :  { %vm25_vm0 = vcmask 259072   ;;  %v165_v0 = vmov 0.0   ;;  %vm166_vm1 = vmmov 0   ;;  %vm45_vm2 = vcmask 261120   ;;  %s222_s1 = inlined_call_operand.vmem [shape: bf16[32,32], index: 1, kind: input, shape index: {}]   ;;  %s223_s0 = inlined_call_operand.vmem [shape: bf16[6,32], index: 0, kind: input, shape index: {}]   ;;  %s224_s2 = inlined_call_operand.vmem [shape: f32[1,32], index: 2, kind: input, shape index: {}]   ;;  %s225_s3 = inlined_call_operand.vmem [shape: f32[1,32], index: 3, kind: input, shape index: {}]   ;;  %s226_s4 = inlined_call_operand.vmem [shape: f32[1,32], index: 4, kind: input, shape index: {}]   ;;  %s227_s5 = inlined_call_operand.vmem [shape: bf16[6,32], index: 5, kind: output, shape index: {}]  }
   0x1   :  { %151 = vmatprep.subr.bf16.mxu0 %v165_v0  ;;  %v161_v1 = vld [vmem:[%s222_s1 + $0x8] sm:$0xff]   ;;  %155 = vmatprep.mubr.msk.bf16.mxu0 %vm166_vm1, %v165_v0  ;;  %26 = vst.msk [vmem:[#allocation2] sm:$0x3f] %vm25_vm0, %v165_v0  ;;  %v162_v2 = vld [vmem:[%s222_s1] sm:$0xff]   ;;  %vm136_vm3 = vcmask 256000  }
   0x2   :  { %152 = vmatpush3.bf16.msra.mxu0 %v161_v1  ;;  %v28_v3 = vld [vmem:[%s223_s0] sm:$0x7] }
   0x3   :  { %153 = vmatprep.subr.bf16.mxu0 %v165_v0  ;;  %v145_v10 = vld [vmem:[%s224_s2] ss:$0 sm:$0xff] }
   0x4   :  { %v146_v24 = vld [vmem:[%s225_s3] ss:$0 sm:$0xff] }
   0x5   :  { %v147_v26 = vld [vmem:[%s226_s4] ss:$0 sm:$0xff] }
   0x6   :  { %154 = vmatpush3.bf16.msra.mxu0 %v162_v2 }
   0x8   :  { %v27_v4 = vld [vmem:[#allocation2] sm:$0x3f] }
   0x9   :  { %156 = vmatmul.mubr.msk.bf16.vlgmr.msra.gmra.mxu0 %vm45_vm2, %v28_v3 }
  0xc9   :  { %v83_v5 = vpop.f32.mrf.mxu0 }
  0xca   :  { %v89_v6 = vadd.f32 %v83_v5, %v27_v4 }
  0xcb   :  { %v157_v7 = vpop.f32.mrf.mxu0 }
  0xcc   :  { %91 = vst.msk [vmem:[#allocation2] sm:$0x3f] %vm25_vm0, %v89_v6 }
  0xcd   :  { %v86_v8 = vpop.f32.mrf.mxu0 }
  0xcf   :  { %v158_v9 = vpop.f32.mrf.mxu0 }
  0xd3   :  { %v95_v11 = vld [vmem:[#allocation2] sm:$0x3f] }
  0xd4   :  { %v103_v12 = vadd.f32 %v145_v10, %v95_v11 }
  0xd6   :  { %v104_v13 = vmax.f32 %v103_v12, 0.0 }
  0xd8   :  { %v105_v14 = vsel %vm25_vm0, %v104_v13, 0.0 }
  0xd9   :  { %106 = vadd.xlane.f32.xlu0 %v105_v14 }
 0x162   :  { %v107_v15 = vpop.xlane.xlu0 %106 }
 0x163   :  { %v109_v16 = vmul.f32 0.03125, %v107_v15 }
 0x165   :  { %v110_v17 = vsub.f32 %v104_v13, %v109_v16 }
 0x167   :  { %v111_v18 = vmul.f32 %v110_v17, %v110_v17 }
 0x169   :  { %v112_v19 = vsel %vm25_vm0, %v111_v18, 0.0 }
 0x16a   :  { %113 = vadd.xlane.f32.xlu0 %v112_v19 }
 0x1f3   :  { %v114_v20 = vpop.xlane.xlu0 %113 }
 0x1f4   :  { %v115_v21 = vmul.f32 0.03125, %v114_v20 }
 0x1f6   :  { %v116_v22 = vadd.f32 1e-05, %v115_v21 }
 0x1f8   :  { %163 = vrsqrt.f32 %v116_v22 }
 0x205   :  { %v164_v23 = vpop.eup %163 }
 0x206   :  { %v118_v25 = vmul.f32 %v164_v23, %v110_v17 }
 0x208   :  { %v126_v27 = vmul.f32 %v146_v24, %v118_v25 }
 0x20a   :  { %v134_v28 = vadd.f32 %v147_v26, %v126_v27 }
 0x20c   :  { %v135_v29 = vpack.c.bf16 %v134_v28, %v134_v28 }
 0x20e   :  { %137 = vst.msk [vmem:[%s227_s5] sm:$0x7] %vm136_vm3, %v135_v29 }

// kernel: bert_model_forward.27
= control target key start
LH: loop header
LB: loop body
LE: loop exit
PB: predicated region body
PF: predicated region fallthrough
CT: control target
= control target key end

     0   :  { %v156_v1 = vmov 0.0   ;;  %vm157_vm0 = vmmov 0   ;;  %vm20_vm1 = vcmask 9216   ;;  %s197_s0 = inlined_call_operand.vmem [shape: bf16[2,32], index: 0, kind: input, shape index: {}]   ;;  %s198_s1 = inlined_call_operand.vmem [shape: bf16[32,2], index: 1, kind: input, shape index: {}]   ;;  %s199_s2 = inlined_call_operand.vmem [shape: f32[1,2], index: 2, kind: input, shape index: {}]   ;;  %s200_s3 = inlined_call_operand.hbm [shape: f32[2,2], index: 3, kind: output, shape index: {}]  }
   0x1   :  { %v132_v0 = vld [vmem:[%s198_s1 + $0x8] sm:$0xff]   ;;  %121 = vmatprep.subr.bf16.mxu0 %v156_v1  ;;  %v133_v2 = vld [vmem:[%s198_s1] sm:$0xff]   ;;  %125 = vmatprep.mubr.msk.bf16.mxu0 %vm157_vm0, %v156_v1 }
   0x2   :  { %122 = vmatpush3.bf16.msra.mxu0 %v132_v0 }
   0x3   :  { %8 = vsyncpa [#allocation4], 0  ;;  %123 = vmatprep.subr.bf16.mxu0 %v156_v1  ;;  %21 = vst.msk [vmem:[#allocation2] sm:$0x3] %vm20_vm1, %v156_v1  ;;  %v23_v3 = vld [vmem:[%s197_s0] sm:$0x1] }
   0x4   :  { %vm40_vm2 = vcmask 261120   ;;  %v117_v10 = vld [vmem:[%s199_s2] ss:$0 sm:$0xff]  ;;  %s158_s19 = smov [#allocation3]  }
   0x5   :  { %s106_s20 = sshll.u32 %s158_s19, 4  ;;  %s107_s20 = int_to_ptr.vmem [resolvable:$true] %s106_s20 }
   0x6   :  { %124 = vmatpush3.bf16.msra.mxu0 %v133_v2  ;;  %s134_s0 = scalar_lea.vmem %s107_s20, 32  ;;  %p139_p1 = scmp.lt.s32.totalorder %s107_s20, %s107_s20 }
   0x7   :  { %p135_p0 = scmp.ne.s32.totalorder %s107_s20, %s134_s0  ;;  %p140_p2 = scmp.lt.s32.totalorder %s134_s0, %s134_s0 }
   0x9   :  { %126 = vmatmul.mubr.msk.bf16.vlgmr.msra.gmra.mxu0 %vm40_vm2, %v23_v3  ;;  %p141_p3 = por %p140_p2, %p139_p1 }
   0xa   :  { %v22_v4 = vld [vmem:[#allocation2] sm:$0x3] }
   0xb   :  { %p142_p4 = pnand %p141_p3, %p135_p0 }
  0xc9   :  { %v78_v5 = vpop.f32.mrf.mxu0 }
  0xca   :  { %v84_v6 = vadd.f32 %v78_v5, %v22_v4 }
  0xcb   :  { %v127_v7 = vpop.f32.mrf.mxu0 }
  0xcc   :  { %86 = vst.msk [vmem:[#allocation2] sm:$0x3] %vm20_vm1, %v84_v6 }
  0xcd   :  { %v81_v8 = vpop.f32.mrf.mxu0 }
  0xcf   :  { %v128_v9 = vpop.f32.mrf.mxu0 }
  0xd3   :  { %v90_v11 = vld [vmem:[#allocation2] sm:$0x3] }
  0xd4   :  { %v98_v12 = vadd.f32 %v117_v10, %v90_v11 }
  0xd6   :  { %99 = vst.msk [vmem:[#allocation3] sm:$0x3] %vm20_vm1, %v98_v12 }
  0xd7   :  { %145 = shalt.err (!%p142_p4)
}
  0xd8   :  { %109 = dma.vmem_to_hbm [thread:$0]  %s107_s20, 32, %s200_s3, [#allocation4]  }
  0xd9   :  { %154 = dma.done.wait [#allocation4], 32  }
  0xda   :  { %155 = vsyncadd [#allocation4], 4294967264 }
  0xdb   :  { %113 = vsyncpa [#allocation4], 1 }

</bundles_post_ra>
